<compile_context>
chip_gen: v7x
topology: tpu7x:2x2x1
jax: 0.10.0
libtpu: 0.0.40
codegen_flags: <defaults>
</compile_context>

<pallas_src>
import jax
import jax.numpy as jnp
import numpy as np
from jax.experimental import pallas as pl
from jax.experimental.pallas import tpu as pltpu

# ---------------- config (small, structurally faithful) ----------------
T = 8                       # sequence length (= input_lengths[0]); batch = 1
C = 4                       # channels per scale (averaged away by .mean(dim=1))
SPATIALS = (2, 4, 8, 16)    # full module: (4, 8, 16, 32)
FEATS = tuple(s * s for s in SPATIALS)            # (4, 16, 64, 256)
HIDDEN = sum(FEATS)                               # GRU hidden (module: 1360)
HP = ((HIDDEN + 127) // 128) * 128                # lane-aligned hidden (module: 1408)
MLP_DIMS = (2048, 1024, 500)                      # hard-coded in the module
D1, D2 = MLP_DIMS[0], MLP_DIMS[1]
N3P = ((MLP_DIMS[2] + 127) // 128) * 128          # 512 (padded classifier output)
VMEM_LIMIT = 48 * 1024 * 1024                     # leaves headroom under v7x 64 MiB


# ============ kernel 1: channel-mean embedding fused with GRU input proj =====
def _embed_gi_kernel(x0_ref, x1_ref, x2_ref, x3_ref,
                     wf0_ref, wf1_ref, wf2_ref, wf3_ref,
                     wb0_ref, wb1_ref, wb2_ref, wb3_ref,
                     bf_ref, bb_ref, gif_ref, gib_ref):
    # gi_dir[t] = sum_i mean_c(x_i[t]) @ Wih_dir_i + b_dir   (gate-padded, f32)
    # Gridded over the three HP-wide gate-column tiles: the w_ih slabs stream
    # as double-buffered column tiles instead of one monolithic VMEM load.
    means = [jnp.mean(r[...], axis=1).astype(jnp.bfloat16)
             for r in (x0_ref, x1_ref, x2_ref, x3_ref)]

    def proj(w_refs, bias):
        acc = bias                                   # (1, HP) broadcasts to (T, HP)
        for m, w in zip(means, w_refs):
            acc = acc + jnp.dot(m, w[...], preferred_element_type=jnp.float32)
        return acc

    gif_ref[...] = proj((wf0_ref, wf1_ref, wf2_ref, wf3_ref), bf_ref[...])
    gib_ref[...] = proj((wb0_ref, wb1_ref, wb2_ref, wb3_ref), bb_ref[...])


def embed_gi_forward(input_seq, wih_f_slabs, wih_b_slabs, bih_f, bih_b):
    flat = [x.reshape(x.shape[0], x.shape[1], -1) for x in input_seq]
    t_len = flat[0].shape[0]
    out_shape = jax.ShapeDtypeStruct((t_len, 3 * HP), jnp.float32)

    x_specs = [pl.BlockSpec(f.shape, lambda j: (0, 0, 0)) for f in flat]
    wf_specs = [pl.BlockSpec((w.shape[0], HP), lambda j: (0, j)) for w in wih_f_slabs]
    wb_specs = [pl.BlockSpec((w.shape[0], HP), lambda j: (0, j)) for w in wih_b_slabs]
    b_spec = pl.BlockSpec((1, HP), lambda j: (0, j))
    gi_spec = pl.BlockSpec((t_len, HP), lambda j: (0, j))

    return pl.pallas_call(
        _embed_gi_kernel,
        out_shape=(out_shape, out_shape),
        grid=(3,),                                   # one step per GRU gate block
        in_specs=x_specs + wf_specs + wb_specs + [b_spec, b_spec],
        out_specs=(gi_spec, gi_spec),
        compiler_params=pltpu.CompilerParams(
            dimension_semantics=("parallel",),
            vmem_limit_bytes=VMEM_LIMIT,
        ),
    )(*flat, *wih_f_slabs, *wih_b_slabs, bih_f, bih_b)


# ============ kernel 2: fused bidirectional GRU recurrence + 3-layer MLP ======
def _bigru_mlp_kernel(gif_ref, gib_ref, whhf_hbm, whhb_hbm, bhhf_ref, bhhb_ref,
                      w1_hbm, b1_ref, w2_hbm, b2_ref, w3_hbm, b3_ref,
                      out_ref,
                      whhf_vmem, whhb_vmem, w1_vmem, w2_vmem, w3_vmem,
                      dma_sem, h_scr):
    t = pl.program_id(0)
    t_last = pl.num_programs(0) - 1

    def whhf_copy():
        return pltpu.make_async_copy(whhf_hbm, whhf_vmem, dma_sem.at[0])

    def whhb_copy():
        return pltpu.make_async_copy(whhb_hbm, whhb_vmem, dma_sem.at[1])

    def mlp_copies():
        return (pltpu.make_async_copy(w1_hbm, w1_vmem, dma_sem.at[2]),
                pltpu.make_async_copy(w2_hbm, w2_vmem, dma_sem.at[3]),
                pltpu.make_async_copy(w3_hbm, w3_vmem, dma_sem.at[4]))

    @pl.when(t == 0)
    def _start():
        # Issue ALL weight DMAs up front; waits are staggered below so the
        # whh_b copy hides behind the first forward GEMV and the ~17 MB of MLP
        # weights hide behind the entire recurrence.
        whhf_copy().start()
        whhb_copy().start()
        for cp in mlp_copies():
            cp.start()
        h_scr[...] = jnp.zeros_like(h_scr)
        whhf_copy().wait()        # only the forward weights gate the first step

    def gru_step(gi, h, whh_vmem, bhh):
        gh = jnp.dot(h.astype(jnp.bfloat16), whh_vmem[...],
                     preferred_element_type=jnp.float32) + bhh
        # PyTorch gate order (r, z, n); each gate is a 128-aligned HP block.
        r = jax.nn.sigmoid(gi[:, 0:HP] + gh[:, 0:HP])
        z = jax.nn.sigmoid(gi[:, HP:2 * HP] + gh[:, HP:2 * HP])
        n = jnp.tanh(gi[:, 2 * HP:3 * HP] + r * gh[:, 2 * HP:3 * HP])
        return (1.0 - z) * n + z * h

    # -------- forward direction, step t --------
    gi_f = gif_ref[pl.ds(t, 1), :]
    h_scr[0:1, :] = gru_step(gi_f, h_scr[0:1, :], whhf_vmem, bhhf_ref[...])

    @pl.when(t == 0)
    def _wait_bwd_weights():
        whhb_copy().wait()        # overlapped with the forward step above

    # -------- backward direction, step t (consumes input at T-1-t) --------
    gi_b = gib_ref[pl.ds(t_last - t, 1), :]
    h_scr[1:2, :] = gru_step(gi_b, h_scr[1:2, :], whhb_vmem, bhhb_ref[...])

    # -------- classifier epilogue, fused on the last step --------
    @pl.when(t == t_last)
    def _mlp():
        for cp in mlp_copies():
            cp.wait()             # DMAs were in flight during the recurrence
        hf = h_scr[0:1, :].astype(jnp.bfloat16)
        hb = h_scr[1:2, :].astype(jnp.bfloat16)
        # hidden.reshape(1,-1) @ w1  ==  hf @ w1[:HP] + hb @ w1[HP:]
        h1 = (jnp.dot(hf, w1_vmem[0:HP, :], preferred_element_type=jnp.float32)
              + jnp.dot(hb, w1_vmem[HP:2 * HP, :], preferred_element_type=jnp.float32)
              + b1_ref[...])
        h1 = jnp.maximum(h1, 0.0).astype(jnp.bfloat16)
        h2 = jnp.maximum(
            jnp.dot(h1, w2_vmem[...], preferred_element_type=jnp.float32)
            + b2_ref[...], 0.0).astype(jnp.bfloat16)
        out_ref[...] = (jnp.dot(h2, w3_vmem[...], preferred_element_type=jnp.float32)
                        + b3_ref[...])


def bigru_mlp_forward(gif, gib, whh_f, whh_b, bhh_f, bhh_b, mlp_packed):
    """gif/gib: (T, 3*HP) f32 precomputed input projections.
    Returns the (1, N3P) padded classifier output."""
    w1p, b1p, w2p, b2p, w3p, b3p = mlp_packed
    t_len = gif.shape[0]
    return pl.pallas_call(
        _bigru_mlp_kernel,
        out_shape=jax.ShapeDtypeStruct((1, N3P), jnp.float32),
        grid=(t_len,),
        in_specs=[
            pl.BlockSpec((t_len, 3 * HP), lambda t: (0, 0)),   # gif (resident)
            pl.BlockSpec((t_len, 3 * HP), lambda t: (0, 0)),   # gib (resident)
            pl.BlockSpec(memory_space=pl.ANY),                 # whh_f: manual DMA
            pl.BlockSpec(memory_space=pl.ANY),                 # whh_b: manual DMA
            pl.BlockSpec((1, 3 * HP), lambda t: (0, 0)),       # bhh_f
            pl.BlockSpec((1, 3 * HP), lambda t: (0, 0)),       # bhh_b
            pl.BlockSpec(memory_space=pl.ANY),                 # w1: manual DMA
            pl.BlockSpec((1, D1), lambda t: (0, 0)),           # b1
            pl.BlockSpec(memory_space=pl.ANY),                 # w2: manual DMA
            pl.BlockSpec((1, D2), lambda t: (0, 0)),           # b2
            pl.BlockSpec(memory_space=pl.ANY),                 # w3: manual DMA
            pl.BlockSpec((1, N3P), lambda t: (0, 0)),          # b3
        ],
        out_specs=pl.BlockSpec((1, N3P), lambda t: (0, 0)),
        scratch_shapes=[
            pltpu.VMEM((HP, 3 * HP), jnp.bfloat16),   # resident whh_f (single buffer)
            pltpu.VMEM((HP, 3 * HP), jnp.bfloat16),   # resident whh_b (single buffer)
            pltpu.VMEM((2 * HP, D1), jnp.bfloat16),   # w1, prefetched behind recurrence
            pltpu.VMEM((D1, D2), jnp.bfloat16),       # w2, prefetched behind recurrence
            pltpu.VMEM((D2, N3P), jnp.bfloat16),      # w3, prefetched behind recurrence
            pltpu.SemaphoreType.DMA((5,)),
            pltpu.VMEM((2, HP), jnp.float32),         # carried hidden states
        ],
        compiler_params=pltpu.CompilerParams(
            dimension_semantics=("arbitrary",),        # sequential recurrence
            vmem_limit_bytes=VMEM_LIMIT,
        ),
    )(gif, gib, whh_f, whh_b, bhh_f, bhh_b, w1p, b1p, w2p, b2p, w3p, b3p)


# ---------------- parameter packing (layout plumbing, done once) -------------
def _gate_pad_cols(w_t):
    """(rows, 3H) gate-stacked (r,z,n) -> (rows, 3*HP); each gate occupies a
    128-aligned HP-wide block (zero padded)."""
    H, Hp = HIDDEN, HP
    out = jnp.zeros((w_t.shape[0], 3 * Hp), w_t.dtype)
    for g in range(3):
        out = out.at[:, g * Hp:g * Hp + H].set(w_t[:, g * H:(g + 1) * H])
    return out


def _gate_pad_bias(b):
    H, Hp = HIDDEN, HP
    out = jnp.zeros((3 * Hp,), b.dtype)
    for g in range(3):
        out = out.at[g * Hp:g * Hp + H].set(b[g * H:(g + 1) * H])
    return out.reshape(1, 3 * Hp)


def pack_params(params):
    """PyTorch-layout f32 params -> padded / bf16 kernel layout."""
    H, Hp = HIDDEN, HP

    def pack_dir(w_ih, w_hh, b_ih, b_hh):
        wih_p = _gate_pad_cols(w_ih.T)                      # (H, 3*HP)
        offs = [0]
        for f in FEATS:
            offs.append(offs[-1] + f)
        wih_slabs = tuple(wih_p[offs[i]:offs[i + 1]].astype(jnp.bfloat16)
                          for i in range(len(FEATS)))       # per-scale (f_i, 3*HP)
        whh_p = jnp.zeros((Hp, 3 * Hp), jnp.float32)
        whh_p = whh_p.at[:H].set(_gate_pad_cols(w_hh.T)).astype(jnp.bfloat16)
        return wih_slabs, whh_p, _gate_pad_bias(b_ih), _gate_pad_bias(b_hh)

    gru_fwd = pack_dir(*params["gru_fwd"])
    gru_bwd = pack_dir(*params["gru_bwd"])

    (w1, b1), (w2, b2), (w3, b3) = params["mlp"]
    w1t = w1.T                                              # (2H, 2048)
    w1p = jnp.zeros((2 * Hp, w1.shape[0]), jnp.float32)
    w1p = w1p.at[:H].set(w1t[:H]).at[Hp:Hp + H].set(w1t[H:2 * H])
    w3p = jnp.zeros((w3.shape[1], N3P), jnp.float32).at[:, :w3.shape[0]].set(w3.T)
    b3p = jnp.zeros((1, N3P), jnp.float32).at[:, :w3.shape[0]].set(b3[None, :])
    mlp = (w1p.astype(jnp.bfloat16), b1.reshape(1, -1),
           w2.T.astype(jnp.bfloat16), b2.reshape(1, -1),
           w3p.astype(jnp.bfloat16), b3p)
    return {"gru_fwd": gru_fwd, "gru_bwd": gru_bwd, "mlp": mlp}


# ---------------- full model forward ------------------------------------------
def seq_classifier_forward(packed, input_seq, input_lengths):
    # pack_padded_sequence / pad_packed_sequence: batch size is 1 and
    # input_lengths[0] == T, so packing is the identity here (handled as glue).
    assert int(input_lengths[0]) == input_seq[0].shape[0]
    wih_f, whh_f, bih_f, bhh_f = packed["gru_fwd"]
    wih_b, whh_b, bih_b, bhh_b = packed["gru_bwd"]
    gif, gib = embed_gi_forward(input_seq, wih_f, wih_b, bih_f, bih_b)
    # Bidirectional GRU + classifier fused in one call: hidden.reshape(1,-1)
    # is realized as two MXU partial products with lane-aligned zero padding
    # (pad lanes stay exactly 0 through the recurrence; MLP w1 pad rows are 0).
    out = bigru_mlp_forward(gif, gib, whh_f, whh_b, bhh_f, bhh_b, packed["mlp"])
    return out[:, :MLP_DIMS[2]]                                       # (1, 500)


# ---------------- deterministic parameter init ---------------------------------
def init_params(key):
    keys = jax.random.split(key, 14)

    def u(k, shape, fan_in, quantize=True):
        bound = 1.0 / np.sqrt(fan_in)
        w = jax.random.uniform(k, shape, jnp.float32, -bound, bound)
        if quantize:   # make weights exactly bf16-representable (kernel uses bf16)
            w = w.astype(jnp.bfloat16).astype(jnp.float32)
        return w

    H = HIDDEN
    gru_fwd = (u(keys[0], (3 * H, H), H), u(keys[1], (3 * H, H), H),
               u(keys[2], (3 * H,), H, False), u(keys[3], (3 * H,), H, False))
    gru_bwd = (u(keys[4], (3 * H, H), H), u(keys[5], (3 * H, H), H),
               u(keys[6], (3 * H,), H, False), u(keys[7], (3 * H,), H, False))
    d1, d2, d3 = MLP_DIMS
    input_size = 2 * H
    mlp = (
        (u(keys[8], (d1, input_size), input_size), u(keys[9], (d1,), input_size, False)),
        (u(keys[10], (d2, d1), d1), u(keys[11], (d2,), d1, False)),
        (u(keys[12], (d3, d2), d2), u(keys[13], (d3,), d2, False)),
    )
    return {"gru_fwd": gru_fwd, "gru_bwd": gru_bwd, "mlp": mlp}


# ---------------- pure-JAX reference (for correctness check) -------------------
def reference_forward(params, input_seq, input_lengths):
    emb = jnp.concatenate(
        [x.reshape(x.shape[0], x.shape[1], -1).mean(axis=1) for x in input_seq],
        axis=1)
    H = HIDDEN

    def gru_dir(xs, w_ih, w_hh, b_ih, b_hh):
        def step(h, x):
            gi = x @ w_ih.T + b_ih
            gh = h @ w_hh.T + b_hh
            r = jax.nn.sigmoid(gi[:H] + gh[:H])
            z = jax.nn.sigmoid(gi[H:2 * H] + gh[H:2 * H])
            n = jnp.tanh(gi[2 * H:] + r * gh[2 * H:])
            return (1.0 - z) * n + z * h, None
        h0 = jnp.zeros((H,), jnp.float32)
        hT, _ = jax.lax.scan(step, h0, xs)
        return hT

    h_fwd = gru_dir(emb, *params["gru_fwd"])
    h_bwd = gru_dir(emb[::-1], *params["gru_bwd"])
    hidden = jnp.concatenate([h_fwd, h_bwd]).reshape(1, -1)
    (w1, b1), (w2, b2), (w3, b3) = params["mlp"]
    h = jnp.maximum(hidden @ w1.T + b1, 0.0)
    h = jnp.maximum(h @ w2.T + b2, 0.0)
    return h @ w3.T + b3


if __name__ == "__main__":
    key = jax.random.PRNGKey(0)
    pkey, *ikeys = jax.random.split(key, 1 + len(SPATIALS))
    params = init_params(pkey)
    packed = pack_params(params)
    input_seq = [jax.random.normal(k, (T, C, s, s), jnp.float32)
                 for k, s in zip(ikeys, SPATIALS)]
    input_lengths = [T]

    result = seq_classifier_forward(packed, input_seq, input_lengths)
    result = jax.block_until_ready(result)
    assert result.shape == (1, MLP_DIMS[-1]), result.shape
    assert bool(jnp.all(jnp.isfinite(result)))

    ref = jax.block_until_ready(reference_forward(params, input_seq, input_lengths))
    np.testing.assert_allclose(np.asarray(result), np.asarray(ref),
                               rtol=3e-2, atol=3e-2)
    print("KERNEL_OK")
</pallas_src>

<mosaic_0001>
module attributes {stable_mosaic.version = 11 : i64} {
  func.func @_embed_gi_kernel(%arg0: i32, %arg1: memref<8x4x4xf32, #tpu.memory_space<vmem>>, %arg2: memref<8x4x16xf32, #tpu.memory_space<vmem>>, %arg3: memref<8x4x64xf32, #tpu.memory_space<vmem>>, %arg4: memref<8x4x256xf32, #tpu.memory_space<vmem>>, %arg5: memref<4x384xbf16, #tpu.memory_space<vmem>>, %arg6: memref<16x384xbf16, #tpu.memory_space<vmem>>, %arg7: memref<64x384xbf16, #tpu.memory_space<vmem>>, %arg8: memref<256x384xbf16, #tpu.memory_space<vmem>>, %arg9: memref<4x384xbf16, #tpu.memory_space<vmem>>, %arg10: memref<16x384xbf16, #tpu.memory_space<vmem>>, %arg11: memref<64x384xbf16, #tpu.memory_space<vmem>>, %arg12: memref<256x384xbf16, #tpu.memory_space<vmem>>, %arg13: memref<1x384xf32, #tpu.memory_space<vmem>>, %arg14: memref<1x384xf32, #tpu.memory_space<vmem>>, %arg15: memref<8x384xf32, #tpu.memory_space<vmem>>, %arg16: memref<8x384xf32, #tpu.memory_space<vmem>>) attributes {dimension_semantics = [#tpu.dimension_semantics<parallel>], iteration_bounds = array<i64: 3>, scalar_prefetch = 0 : i64, scratch_operands = 0 : i64, tpu.core_type = #tpu.core_type<tc>, window_params = [{pipeline_mode = #tpu.pipeline_mode<synchronous>, transform_indices = @transform_0, window_bounds = array<i64: 8, 4, 4>}, {pipeline_mode = #tpu.pipeline_mode<synchronous>, transform_indices = @transform_1, window_bounds = array<i64: 8, 4, 16>}, {pipeline_mode = #tpu.pipeline_mode<synchronous>, transform_indices = @transform_2, window_bounds = array<i64: 8, 4, 64>}, {pipeline_mode = #tpu.pipeline_mode<synchronous>, transform_indices = @transform_3, window_bounds = array<i64: 8, 4, 256>}, {transform_indices = @transform_4, window_bounds = array<i64: 4, 384>}, {transform_indices = @transform_5, window_bounds = array<i64: 16, 384>}, {transform_indices = @transform_6, window_bounds = array<i64: 64, 384>}, {transform_indices = @transform_7, window_bounds = array<i64: 256, 384>}, {transform_indices = @transform_8, window_bounds = array<i64: 4, 384>}, {transform_indices = @transform_9, window_bounds = array<i64: 16, 384>}, {transform_indices = @transform_10, window_bounds = array<i64: 64, 384>}, {transform_indices = @transform_11, window_bounds = array<i64: 256, 384>}, {transform_indices = @transform_12, window_bounds = array<i64: 1, 384>}, {transform_indices = @transform_13, window_bounds = array<i64: 1, 384>}, {transform_indices = @transform_14, window_bounds = array<i64: 8, 384>}, {transform_indices = @transform_15, window_bounds = array<i64: 8, 384>}]} {
    %c0 = arith.constant 0 : index
    %c0_0 = arith.constant 0 : index
    %c0_1 = arith.constant 0 : index
    %0 = vector.load %arg1[%c0, %c0_0, %c0_1] : memref<8x4x4xf32, #tpu.memory_space<vmem>>, vector<8x4x4xf32>
    %cst = arith.constant dense<0.000000e+00> : vector<8x4xf32>
    %1 = vector.multi_reduction <add>, %0, %cst [1] : vector<8x4x4xf32> to vector<8x4xf32>
    %cst_2 = arith.constant 4.000000e+00 : f32
    %2 = vector.broadcast %cst_2 : f32 to vector<8x4xf32>
    %3 = arith.divf %1, %2 : vector<8x4xf32>
    %4 = arith.truncf %3 : vector<8x4xf32> to vector<8x4xbf16>
    %c0_3 = arith.constant 0 : index
    %c0_4 = arith.constant 0 : index
    %c0_5 = arith.constant 0 : index
    %5 = vector.load %arg2[%c0_3, %c0_4, %c0_5] : memref<8x4x16xf32, #tpu.memory_space<vmem>>, vector<8x4x16xf32>
    %cst_6 = arith.constant dense<0.000000e+00> : vector<8x16xf32>
    %6 = vector.multi_reduction <add>, %5, %cst_6 [1] : vector<8x4x16xf32> to vector<8x16xf32>
    %cst_7 = arith.constant 4.000000e+00 : f32
    %7 = vector.broadcast %cst_7 : f32 to vector<8x16xf32>
    %8 = arith.divf %6, %7 : vector<8x16xf32>
    %9 = arith.truncf %8 : vector<8x16xf32> to vector<8x16xbf16>
    %c0_8 = arith.constant 0 : index
    %c0_9 = arith.constant 0 : index
    %c0_10 = arith.constant 0 : index
    %10 = vector.load %arg3[%c0_8, %c0_9, %c0_10] : memref<8x4x64xf32, #tpu.memory_space<vmem>>, vector<8x4x64xf32>
    %cst_11 = arith.constant dense<0.000000e+00> : vector<8x64xf32>
    %11 = vector.multi_reduction <add>, %10, %cst_11 [1] : vector<8x4x64xf32> to vector<8x64xf32>
    %cst_12 = arith.constant 4.000000e+00 : f32
    %12 = vector.broadcast %cst_12 : f32 to vector<8x64xf32>
    %13 = arith.divf %11, %12 : vector<8x64xf32>
    %14 = arith.truncf %13 : vector<8x64xf32> to vector<8x64xbf16>
    %c0_13 = arith.constant 0 : index
    %c0_14 = arith.constant 0 : index
    %c0_15 = arith.constant 0 : index
    %15 = vector.load %arg4[%c0_13, %c0_14, %c0_15] : memref<8x4x256xf32, #tpu.memory_space<vmem>>, vector<8x4x256xf32>
    %cst_16 = arith.constant dense<0.000000e+00> : vector<8x256xf32>
    %16 = vector.multi_reduction <add>, %15, %cst_16 [1] : vector<8x4x256xf32> to vector<8x256xf32>
    %cst_17 = arith.constant 4.000000e+00 : f32
    %17 = vector.broadcast %cst_17 : f32 to vector<8x256xf32>
    %18 = arith.divf %16, %17 : vector<8x256xf32>
    %19 = arith.truncf %18 : vector<8x256xf32> to vector<8x256xbf16>
    %c0_18 = arith.constant 0 : index
    %c0_19 = arith.constant 0 : index
    %20 = vector.load %arg13[%c0_18, %c0_19] : memref<1x384xf32, #tpu.memory_space<vmem>>, vector<1x384xf32>
    %c0_20 = arith.constant 0 : index
    %c0_21 = arith.constant 0 : index
    %21 = vector.load %arg5[%c0_20, %c0_21] : memref<4x384xbf16, #tpu.memory_space<vmem>>, vector<4x384xbf16>
    %cst_22 = arith.constant dense<0.000000e+00> : vector<8x384xf32>
    %22 = tpu.matmul %4, %21, %cst_22 {dimension_numbers = #tpu.dot_dimension_numbers<[1], [0], [0], [1], [0, 0, 1, 1], [], []>} : vector<8x4xbf16>, vector<4x384xbf16>, vector<8x384xf32> -> vector<8x384xf32>
    %23 = vector.broadcast %20 : vector<1x384xf32> to vector<8x384xf32>
    %24 = arith.addf %23, %22 : vector<8x384xf32>
    %c0_23 = arith.constant 0 : index
    %c0_24 = arith.constant 0 : index
    %25 = vector.load %arg6[%c0_23, %c0_24] : memref<16x384xbf16, #tpu.memory_space<vmem>>, vector<16x384xbf16>
    %cst_25 = arith.constant dense<0.000000e+00> : vector<8x384xf32>
    %26 = tpu.matmul %9, %25, %cst_25 {dimension_numbers = #tpu.dot_dimension_numbers<[1], [0], [0], [1], [0, 0, 1, 1], [], []>} : vector<8x16xbf16>, vector<16x384xbf16>, vector<8x384xf32> -> vector<8x384xf32>
    %27 = arith.addf %24, %26 : vector<8x384xf32>
    %c0_26 = arith.constant 0 : index
    %c0_27 = arith.constant 0 : index
    %28 = vector.load %arg7[%c0_26, %c0_27] : memref<64x384xbf16, #tpu.memory_space<vmem>>, vector<64x384xbf16>
    %cst_28 = arith.constant dense<0.000000e+00> : vector<8x384xf32>
    %29 = tpu.matmul %14, %28, %cst_28 {dimension_numbers = #tpu.dot_dimension_numbers<[1], [0], [0], [1], [0, 0, 1, 1], [], []>} : vector<8x64xbf16>, vector<64x384xbf16>, vector<8x384xf32> -> vector<8x384xf32>
    %30 = arith.addf %27, %29 : vector<8x384xf32>
    %c0_29 = arith.constant 0 : index
    %c0_30 = arith.constant 0 : index
    %31 = vector.load %arg8[%c0_29, %c0_30] : memref<256x384xbf16, #tpu.memory_space<vmem>>, vector<256x384xbf16>
    %cst_31 = arith.constant dense<0.000000e+00> : vector<8x384xf32>
    %32 = tpu.matmul %19, %31, %cst_31 {dimension_numbers = #tpu.dot_dimension_numbers<[1], [0], [0], [1], [0, 0, 1, 1], [], []>} : vector<8x256xbf16>, vector<256x384xbf16>, vector<8x384xf32> -> vector<8x384xf32>
    %33 = arith.addf %30, %32 : vector<8x384xf32>
    %c0_32 = arith.constant 0 : index
    %c0_33 = arith.constant 0 : index
    %34 = vector.load %arg15[%c0_32, %c0_33] : memref<8x384xf32, #tpu.memory_space<vmem>>, vector<8x384xf32>
    tpu.vector_store %arg15[%c0_32, %c0_33], %33 {strides = array<i32>} : memref<8x384xf32, #tpu.memory_space<vmem>>, vector<8x384xf32>,
    %c0_34 = arith.constant 0 : index
    %c0_35 = arith.constant 0 : index
    %35 = vector.load %arg14[%c0_34, %c0_35] : memref<1x384xf32, #tpu.memory_space<vmem>>, vector<1x384xf32>
    %c0_36 = arith.constant 0 : index
    %c0_37 = arith.constant 0 : index
    %36 = vector.load %arg9[%c0_36, %c0_37] : memref<4x384xbf16, #tpu.memory_space<vmem>>, vector<4x384xbf16>
    %cst_38 = arith.constant dense<0.000000e+00> : vector<8x384xf32>
    %37 = tpu.matmul %4, %36, %cst_38 {dimension_numbers = #tpu.dot_dimension_numbers<[1], [0], [0], [1], [0, 0, 1, 1], [], []>} : vector<8x4xbf16>, vector<4x384xbf16>, vector<8x384xf32> -> vector<8x384xf32>
    %38 = vector.broadcast %35 : vector<1x384xf32> to vector<8x384xf32>
    %39 = arith.addf %38, %37 : vector<8x384xf32>
    %c0_39 = arith.constant 0 : index
    %c0_40 = arith.constant 0 : index
    %40 = vector.load %arg10[%c0_39, %c0_40] : memref<16x384xbf16, #tpu.memory_space<vmem>>, vector<16x384xbf16>
    %cst_41 = arith.constant dense<0.000000e+00> : vector<8x384xf32>
    %41 = tpu.matmul %9, %40, %cst_41 {dimension_numbers = #tpu.dot_dimension_numbers<[1], [0], [0], [1], [0, 0, 1, 1], [], []>} : vector<8x16xbf16>, vector<16x384xbf16>, vector<8x384xf32> -> vector<8x384xf32>
    %42 = arith.addf %39, %41 : vector<8x384xf32>
    %c0_42 = arith.constant 0 : index
    %c0_43 = arith.constant 0 : index
    %43 = vector.load %arg11[%c0_42, %c0_43] : memref<64x384xbf16, #tpu.memory_space<vmem>>, vector<64x384xbf16>
    %cst_44 = arith.constant dense<0.000000e+00> : vector<8x384xf32>
    %44 = tpu.matmul %14, %43, %cst_44 {dimension_numbers = #tpu.dot_dimension_numbers<[1], [0], [0], [1], [0, 0, 1, 1], [], []>} : vector<8x64xbf16>, vector<64x384xbf16>, vector<8x384xf32> -> vector<8x384xf32>
    %45 = arith.addf %42, %44 : vector<8x384xf32>
    %c0_45 = arith.constant 0 : index
    %c0_46 = arith.constant 0 : index
    %46 = vector.load %arg12[%c0_45, %c0_46] : memref<256x384xbf16, #tpu.memory_space<vmem>>, vector<256x384xbf16>
    %cst_47 = arith.constant dense<0.000000e+00> : vector<8x384xf32>
    %47 = tpu.matmul %19, %46, %cst_47 {dimension_numbers = #tpu.dot_dimension_numbers<[1], [0], [0], [1], [0, 0, 1, 1], [], []>} : vector<8x256xbf16>, vector<256x384xbf16>, vector<8x384xf32> -> vector<8x384xf32>
    %48 = arith.addf %45, %47 : vector<8x384xf32>
    %c0_48 = arith.constant 0 : index
    %c0_49 = arith.constant 0 : index
    %49 = vector.load %arg16[%c0_48, %c0_49] : memref<8x384xf32, #tpu.memory_space<vmem>>, vector<8x384xf32>
    tpu.vector_store %arg16[%c0_48, %c0_49], %48 {strides = array<i32>} : memref<8x384xf32, #tpu.memory_space<vmem>>, vector<8x384xf32>,
    return
  }
  func.func @transform_0(%arg0: i32) -> (i32, i32, i32) {
    %c0_i32 = arith.constant 0 : i32
    %c0_i32_0 = arith.constant 0 : i32
    %c0_i32_1 = arith.constant 0 : i32
    %c0_i32_2 = arith.constant 0 : i32
    return %c0_i32, %c0_i32_0, %c0_i32_1 : i32, i32, i32
  }
  func.func @transform_1(%arg0: i32) -> (i32, i32, i32) {
    %c0_i32 = arith.constant 0 : i32
    %c0_i32_0 = arith.constant 0 : i32
    %c0_i32_1 = arith.constant 0 : i32
    %c0_i32_2 = arith.constant 0 : i32
    return %c0_i32, %c0_i32_0, %c0_i32_1 : i32, i32, i32
  }
  func.func @transform_2(%arg0: i32) -> (i32, i32, i32) {
    %c0_i32 = arith.constant 0 : i32
    %c0_i32_0 = arith.constant 0 : i32
    %c0_i32_1 = arith.constant 0 : i32
    %c0_i32_2 = arith.constant 0 : i32
    return %c0_i32, %c0_i32_0, %c0_i32_1 : i32, i32, i32
  }
  func.func @transform_3(%arg0: i32) -> (i32, i32, i32) {
    %c0_i32 = arith.constant 0 : i32
    %c0_i32_0 = arith.constant 0 : i32
    %c0_i32_1 = arith.constant 0 : i32
    %c0_i32_2 = arith.constant 0 : i32
    return %c0_i32, %c0_i32_0, %c0_i32_1 : i32, i32, i32
  }
  func.func @transform_4(%arg0: i32) -> (i32, i32) {
    %c0_i32 = arith.constant 0 : i32
    %c0_i32_0 = arith.constant 0 : i32
    return %c0_i32, %arg0 : i32, i32
  }
  func.func @transform_5(%arg0: i32) -> (i32, i32) {
    %c0_i32 = arith.constant 0 : i32
    %c0_i32_0 = arith.constant 0 : i32
    return %c0_i32, %arg0 : i32, i32
  }
  func.func @transform_6(%arg0: i32) -> (i32, i32) {
    %c0_i32 = arith.constant 0 : i32
    %c0_i32_0 = arith.constant 0 : i32
    return %c0_i32, %arg0 : i32, i32
  }
  func.func @transform_7(%arg0: i32) -> (i32, i32) {
    %c0_i32 = arith.constant 0 : i32
    %c0_i32_0 = arith.constant 0 : i32
    return %c0_i32, %arg0 : i32, i32
  }
  func.func @transform_8(%arg0: i32) -> (i32, i32) {
    %c0_i32 = arith.constant 0 : i32
    %c0_i32_0 = arith.constant 0 : i32
    return %c0_i32, %arg0 : i32, i32
  }
  func.func @transform_9(%arg0: i32) -> (i32, i32) {
    %c0_i32 = arith.constant 0 : i32
    %c0_i32_0 = arith.constant 0 : i32
    return %c0_i32, %arg0 : i32, i32
  }
  func.func @transform_10(%arg0: i32) -> (i32, i32) {
    %c0_i32 = arith.constant 0 : i32
    %c0_i32_0 = arith.constant 0 : i32
    return %c0_i32, %arg0 : i32, i32
  }
  func.func @transform_11(%arg0: i32) -> (i32, i32) {
    %c0_i32 = arith.constant 0 : i32
    %c0_i32_0 = arith.constant 0 : i32
    return %c0_i32, %arg0 : i32, i32
  }
  func.func @transform_12(%arg0: i32) -> (i32, i32) {
    %c0_i32 = arith.constant 0 : i32
    %c0_i32_0 = arith.constant 0 : i32
    return %c0_i32, %arg0 : i32, i32
  }
  func.func @transform_13(%arg0: i32) -> (i32, i32) {
    %c0_i32 = arith.constant 0 : i32
    %c0_i32_0 = arith.constant 0 : i32
    return %c0_i32, %arg0 : i32, i32
  }
  func.func @transform_14(%arg0: i32) -> (i32, i32) {
    %c0_i32 = arith.constant 0 : i32
    %c0_i32_0 = arith.constant 0 : i32
    return %c0_i32, %arg0 : i32, i32
  }
  func.func @transform_15(%arg0: i32) -> (i32, i32) {
    %c0_i32 = arith.constant 0 : i32
    %c0_i32_0 = arith.constant 0 : i32
    return %c0_i32, %arg0 : i32, i32
  }
}

</mosaic_0001>

<bundles_post_ra>
// kernel: tpu_custom_call.1
= control target key start
LH: loop header
LB: loop body
LE: loop exit
PB: predicated region body
PF: predicated region fallthrough
CT: control target
= control target key end

     0   :  { %s5434_s0 = inlined_call_operand.vmem [shape: f32[8,4,4], index: 0, kind: input, shape index: {}]   ;;  %s5435_s1 = inlined_call_operand.hbm [shape: f32[8,4,16], index: 1, kind: input, shape index: {}]   ;;  %s5436_s2 = inlined_call_operand.hbm [shape: f32[8,4,64], index: 2, kind: input, shape index: {}]   ;;  %s5437_s3 = inlined_call_operand.hbm [shape: f32[8,4,256], index: 3, kind: input, shape index: {}]   ;;  %s5438_s4 = inlined_call_operand.hbm [shape: bf16[4,1152], index: 4, kind: input, shape index: {}]   ;;  %s5439_s5 = inlined_call_operand.hbm [shape: bf16[16,1152], index: 5, kind: input, shape index: {}]   ;;  %s5440_s6 = inlined_call_operand.hbm [shape: bf16[64,1152], index: 6, kind: input, shape index: {}]   ;;  %s5441_s7 = inlined_call_operand.hbm [shape: bf16[256,1152], index: 7, kind: input, shape index: {}]   ;;  %s5442_s8 = inlined_call_operand.hbm [shape: bf16[4,1152], index: 8, kind: input, shape index: {}]   ;;  %s5443_s9 = inlined_call_operand.vmem [shape: bf16[16,1152], index: 9, kind: input, shape index: {}]   ;;  %s5444_s10 = inlined_call_operand.hbm [shape: bf16[64,1152], index: 10, kind: input, shape index: {}]   ;;  %s5445_s11 = inlined_call_operand.hbm [shape: bf16[256,1152], index: 11, kind: input, shape index: {}]   ;;  %s5446_s12 = inlined_call_operand.vmem [shape: f32[1,1152], index: 12, kind: input, shape index: {}]   ;;  %s5447_s13 = inlined_call_operand.vmem [shape: f32[1,1152], index: 13, kind: input, shape index: {}]   ;;  %s5448_s14 = inlined_call_operand.hbm [shape: f32[8,1152], index: 14, kind: output, shape index: {0}]   ;;  %s5449_s15 = inlined_call_operand.hbm [shape: f32[8,1152], index: 15, kind: output, shape index: {1}]  }
   0x1   :  { %5473 = sst [smem:[#allocation38_spill]] %s5434_s0 }
   0x2   :  { %5474 = sst [smem:[#allocation39_spill]] %s5435_s1 }
   0x3   :  { %5475 = sst [smem:[#allocation40_spill]] %s5436_s2 }
   0x4   :  { %5476 = sst [smem:[#allocation41_spill]] %s5437_s3 }
   0x5   :  { %5477 = sst [smem:[#allocation42_spill]] %s5446_s12 }
   0x6   :  { %5478 = sst [smem:[#allocation43_spill]] %s5447_s13 }
   0x7   :  { %5479 = sst [smem:[#allocation44_spill]] %s5448_s14 }
   0x8   :  { %5480 = sst [smem:[#allocation45_spill]] %s5449_s15 }
   0x9   :  { %21 = vsyncpa [#allocation3], 0 }
   0xa   :  { %22 = vsyncpa [#allocation6], 0 }
   0xb   :  { %23 = vsyncpa [#allocation9], 0 }
   0xc   :  { %25 = vsyncpa [#allocation9 + $0x1], 0 }
   0xd   :  { %26 = vsyncpa [#allocation12], 0 }
   0xe   :  { %28 = vsyncpa [#allocation12 + $0x1], 0 }
   0xf   :  { %29 = vsyncpa [#allocation15], 0 }
  0x10   :  { %31 = vsyncpa [#allocation15 + $0x1], 0 }
  0x11   :  { %32 = vsyncpa [#allocation19], 0 }
  0x12   :  { %34 = vsyncpa [#allocation19 + $0x1], 0 }
  0x13   :  { %35 = vsyncpa [#allocation4], 0 }
  0x14   :  { %37 = vsyncpa [#allocation4 + $0x1], 0 }
  0x15   :  { %38 = vsyncpa [#allocation22], 0 }
  0x16   :  { %40 = vsyncpa [#allocation22 + $0x1], 0  ;;  %s4511_s18 = smov 0   ;;  %s4513_s19 = smov 0  }
  0x17   :  { %s4515_s20 = smov 0   ;;  %s4517_s21 = smov 0  }
  0x18 LB: > { %5481 = sst [smem:[#allocation31_spill]] %s4394_s18  ;;  %s4532_s22 = sadd.s32 4294967295, %s4406_s21   ;;  %s4406_s21 = sphi %s4517_s21, %s5526_s21   ;;  %s4402_s20 = sphi %s4515_s20, %s5530_s20   ;;  %s4398_s19 = sphi %s4513_s19, %s5529_s19   ;;  %s4394_s18 = sphi %s4511_s18, %s5527_s18  }
  0x19   : > { %5482 = sst [smem:[#allocation32_spill]] %s4398_s19  ;;  %s3404_s23 = sadd.s32 4294967294, %s4406_s21  }
  0x1a   : > { %s4536_s24 = sadd.s32 1, %s4406_s21   ;;  %s137_s25 = sadd.s32 1, %s4402_s20 }
  0x1b   : > { %5483 = sst [smem:[#allocation33_spill]] %s4536_s24  ;;  %s134_s26 = ssub.s32 %s4406_s21, %s4536_s24 }
  0x1c   : > { %p144_p0 = scmp.ne.s32.totalorder %s4402_s20, %s4398_s19  ;;  %p135_p1 = scmp.eq.s32.totalorder %s134_s26, 0 }
  0x1d   : > { %p145_p2 = scmp.eq.s32.totalorder %s4406_s21, 0  ;;  %p150_p3 = scmp.ne.s32.totalorder %s4398_s19, %s4394_s18 }
  0x1e   : > { %p5458_p4 = scmp.eq.s32.totalorder %s4532_s22, 0  ;;  %p408_p7 = scmp.eq.s32.totalorder %s4532_s22, 2 }
  0x1f   : > { %s4548_s27 = scalar_select %p135_p1, %s4402_s20, %s137_s25  }
  0x20   : > { %p4550_p5 = por %p145_p2, %p144_p0  ;;  %p4556_p6 = por %p5458_p4, %p150_p3 }
  0x21   : > { %5484 = sst [smem:[#allocation34_spill]] %s4548_s27  ;;  %p414_p8 = scmp.eq.s32.totalorder %s3404_s23, 2 }
  0x22   : > { %s5485_s28 = scalar_select %p4550_p5, 1, 0 }
  0x23   : > { %s5486_s29 = scalar_select %p4556_p6, 1, 0 }
  0x24   : > { %p3405_p9 = scmp.ge.s32.totalorder %s4406_s21, 1  ;;  %p447_p10 = scmp.lt.s32.totalorder %s4406_s21, 4 }
  0x25   : > { %5487 = sst [smem:[#allocation35_spill]] %s5486_s29  ;;  %p4563_p11 = por %p408_p7, %p144_p0 }
  0x26   : > { %p4567_p12 = por %p414_p8, %p150_p3  ;;  %p4571_p13 = pnand %p3405_p9, %p447_p10 }
  0x27   : > { %s5488_s30 = scalar_select %p4563_p11, 1, 0 }
  0x28   : > { %s5490_s16 = scalar_select %p4567_p12, 1, 0 }
  0x29   : > { %5489 = sst [smem:[#allocation36_spill]] %s5488_s30  ;;  %p3760_p1 = pneg %p4571_p13 }
  0x2a   : > { %5491 = sst [smem:[#allocation37_spill]] %s5490_s16  ;;  %s4408_s25 = smov [#allocation5]  }
  0x2b   : > { %s5492_s17 = scalar_select %p4571_p13, 1, 0 }
  0x2c   : > { %s475_s26 = sshll.u32 %s4408_s25, 4  ;;  %p4579_p2 = pnand %p3760_p1, %p5458_p4  ;;  %s476_s26 = int_to_ptr.vmem [resolvable:$true] %s475_s26 }
  0x2d   : > { %s4409_s27 = smov [#allocation2]   ;;  %s5494_s2 = sld [smem:[#allocation40_spill]] }
  0x2e   : > { %s462_s24 = sshll.u32 %s4409_s27, 4  ;;  %p4593_p3 = pneg %p4579_p2  ;;  %s4583_s24 = int_to_ptr.vmem [resolvable:$true] %s462_s24 }
  0x33   : > { %s4008_s15 = scalar_lea.hbm %s5494_s2, 512 }
  0x34   : > { %p4009_p0 = scmp.ne.s32.totalorder %s5494_s2, %s4008_s15  ;;  %p4015_p9 = scmp.lt.u32.totalorder %s4008_s15, %s5494_s2 }
  0x36   : > { %p4011_p7 = pnand %p4593_p3, %p4009_p0 }
  0x38   : > { %p4012_p8 = pneg %p4011_p7 }
  0x3a   : > { %p4017_p10 = pnand %p4015_p9, %p4012_p8 }
  0x3c   : > { %4020 = shalt.err (!%p4017_p10)
}
  0x3d   : > { %s4021_s18 = scalar_lea.vmem %s476_s26, 512  ;;  %p4029_p11 = scmp.lt.s32.totalorder %s476_s26, %s476_s26 }
  0x3e   : > { %p4022_p1 = scmp.ne.s32.totalorder %s476_s26, %s4021_s18  ;;  %p4030_p6 = scmp.lt.s32.totalorder %s4021_s18, %s4021_s18 }
  0x40   : > { %p4024_p4 = pnand %p4022_p1, %p4593_p3  ;;  %p4031_p13 = por %p4030_p6, %p4029_p11 }
  0x42   : > { %p4025_p12 = pneg %p4024_p4 }
  0x44   : > { %p4032_p5 = pnand %p4031_p13, %p4025_p12 }
  0x46   : > { %4035 = shalt.err (!%p4032_p5)
}
  0x47   : > { %s4410_s14 = smov 64   ;;  %s4411_s30 = smov 4  }
  0x48   : > { %3766 = dma.hbm_to_vmem [thread:$0]  (!%p4579_p2), %s5494_s2, 512, %s476_s26, [#allocation6], %s4410_s14, %s4410_s14, %s4411_s30  }
  0x49   : > { %s5496_s1 = sld [smem:[#allocation39_spill]] }
  0x4f   : > { %s4036_s12 = scalar_lea.hbm %s5496_s1, 512 }
  0x50   : > { %p4037_p4 = scmp.ne.s32.totalorder %s5496_s1, %s4036_s12  ;;  %p4043_p11 = scmp.lt.u32.totalorder %s4036_s12, %s5496_s1 }
  0x52   : > { %p4039_p6 = pnand %p4037_p4, %p4593_p3 }
  0x54   : > { %p4040_p5 = pneg %p4039_p6 }
  0x56   : > { %p4045_p12 = pnand %p4043_p11, %p4040_p5 }
  0x58   : > { %4048 = shalt.err (!%p4045_p12)
}
  0x59   : > { %s4049_s26 = scalar_lea.vmem %s4583_s24, 512  ;;  %p4057_p8 = scmp.lt.s32.totalorder %s4583_s24, %s4583_s24 }
  0x5a   : > { %p4050_p13 = scmp.ne.s32.totalorder %s4583_s24, %s4049_s26  ;;  %p4058_p9 = scmp.lt.s32.totalorder %s4049_s26, %s4049_s26 }
  0x5c   : > { %p4052_p0 = pnand %p4050_p13, %p4593_p3  ;;  %p4059_p10 = por %p4058_p9, %p4057_p8 }
  0x5e   : > { %p4053_p7 = pneg %p4052_p0 }
  0x60   : > { %p4060_p1 = pnand %p4059_p10, %p4053_p7 }
  0x62   : > { %4063 = shalt.err (!%p4060_p1)
}
  0x63   : > { %3763 = dma.hbm_to_vmem [thread:$0]  (!%p4579_p2), %s5496_s1, 512, %s4583_s24, [#allocation3], %s4410_s14, %s4410_s14, %s4411_s30  }
  0x64   : > { %s4412_s19 = smov [#allocation7]   ;;  %s5497_s3 = sld [smem:[#allocation41_spill]] }
  0x65   : > { %s488_s29 = sshll.u32 %s4412_s19, 4  ;;  %s489_s29 = int_to_ptr.vmem [resolvable:$true] %s488_s29 }
  0x6a   : > { %s4064_s16 = scalar_lea.hbm %s5497_s3, 1024 }
  0x6b   : > { %p4065_p4 = scmp.ne.s32.totalorder %s5497_s3, %s4064_s16  ;;  %p4071_p11 = scmp.lt.u32.totalorder %s4064_s16, %s5497_s3 }
  0x6d   : > { %p4067_p6 = pnand %p4065_p4, %p4593_p3 }
  0x6f   : > { %p4068_p5 = pneg %p4067_p6 }
  0x71   : > { %p4073_p12 = pnand %p4071_p11, %p4068_p5 }
  0x73   : > { %4076 = shalt.err (!%p4073_p12)
}
  0x74   : > { %s4077_s24 = scalar_lea.vmem %s489_s29, 1024  ;;  %p4085_p8 = scmp.lt.s32.totalorder %s489_s29, %s489_s29 }
  0x75   : > { %p4078_p13 = scmp.ne.s32.totalorder %s489_s29, %s4077_s24  ;;  %p4086_p9 = scmp.lt.s32.totalorder %s4077_s24, %s4077_s24 }
  0x77   : > { %p4080_p0 = pnand %p4078_p13, %p4593_p3  ;;  %p4087_p10 = por %p4086_p9, %p4085_p8 }
  0x79   : > { %p4081_p7 = pneg %p4080_p0 }
  0x7b   : > { %p4088_p1 = pnand %p4087_p10, %p4081_p7 }
  0x7d   : > { %4091 = shalt.err (!%p4088_p1)
}
  0x7e   : > { %s4413_s14 = smov 128   ;;  %s4414_s30 = smov 8  }
  0x7f   : > { %3769 = dma.hbm_to_vmem [thread:$0]  (!%p4579_p2), %s5497_s3, 1024, %s489_s29, [#allocation6], %s4413_s14, %s4413_s14, %s4414_s30  }
  0x80   : > { %p3409_p4 = scmp.ge.s32.totalorder %s4406_s21, 3 }
  0x81   : > { %s4652_s25 = sand.u32 (!%p3409_p4), 1, %s4406_s21   ;;  %s4655_s12 = sand.u32 (!%p3409_p4), 1, %s4402_s20  }
  0x82   : > { %498 = sbr.rel (%p3409_p4) target bundleno = 312 (0x138), region = 32  ;;  %s5470_s24 = scalar_lea.sflag (!%p3409_p4), [#allocation9], %s4652_s25 }
  0x83   : > { %s5468_s23 = smul.u32 (!%p3409_p4), 6, %s4655_s12  ;;  %p5498_p3 = scmp.ne.s32.totalorder (!%p3409_p4), %s5485_s28, 0 }
  0x84   : > { %s5469_s19 = smul.u32 (!%p3409_p4), 96, %s4406_s21  ;;  %s4096_s2 = scalar_lea.hbm (!%p3409_p4), %s5438_s4, 288 }
  0x85   : > { %s5471_s29 = smul.u32 (!%p3409_p4), 24, %s4655_s12  ;;  %s506_s27 = scalar_lea.vmem (!%p3409_p4), [#allocation8], %s5468_s23 }
  0x86   : > { %s4665_s16 = scalar_lea.hbm (!%p3409_p4), %s5438_s4, %s5469_s19  ;;  %s514_s18 = sshll.u32 (!%p3409_p4), %s506_s27, 4  ;;  %s4669_s18 = int_to_ptr.vmem [resolvable:$true] %s514_s18 }
  0x87   : > { %s4092_s14 = scalar_lea.hbm (!%p3409_p4), %s4665_s16, 96  ;;  %p4097_p11 = scmp.lt.u32.totalorder (!%p3409_p4), %s4665_s16, %s5438_s4 }
  0x88   : > { %p4093_p2 = scmp.ne.s32.totalorder (!%p3409_p4), %s4665_s16, %s4092_s14  ;;  %p4098_p12 = scmp.lt.u32.totalorder (!%p3409_p4), %s4096_s2, %s4092_s14 }
  0x89   : > { %p4100_p0 = scmp.lt.u32.totalorder %s4092_s14, %s4665_s16 }
  0x8a   : > { %p4094_p6 = pnand %p4093_p2, %p5498_p3  ;;  %p4099_p13 = por %p4098_p12, %p4097_p11 }
  0x8c   : > { %p4095_p5 = pneg %p4094_p6  ;;  %p4101_p7 = por %p4100_p0, %p4099_p13 }
  0x8e   : > { %p4102_p8 = pnand %p4101_p7, %p4095_p5 }
  0x90   : > { %4105 = shalt.err (!%p4102_p8)
}
  0x91   : > { %s4106_s27 = scalar_lea.vmem %s4669_s18, 96  ;;  %s4415_s30 = smov [#allocation8]  }
  0x92   : > { %p4107_p9 = scmp.ne.s32.totalorder %s4669_s18, %s4106_s27  ;;  %s4110_s0 = sshll.u32 %s4415_s30, 4  ;;  %s4111_s0 = int_to_ptr.vmem [resolvable:$false] %s4110_s0 }
  0x93   : > { %s4112_s13 = scalar_lea.vmem %s4111_s0, 192  ;;  %p4113_p4 = scmp.lt.s32.totalorder %s4669_s18, %s4111_s0 }
  0x94   : > { %p4108_p10 = pnand %p4107_p9, %p5498_p3  ;;  %p4114_p2 = scmp.lt.s32.totalorder %s4112_s13, %s4106_s27 }
  0x96   : > { %p4109_p1 = pneg %p4108_p10  ;;  %p4115_p6 = por %p4114_p2, %p4113_p4 }
  0x98   : > { %p4116_p11 = pnand %p4115_p6, %p4109_p1 }
  0x9a   : > { %4119 = shalt.err (!%p4116_p11)
}
  0x9b   : > { %3736 = dma.hbm_to_vmem [thread:$0]  (%p5498_p3), %s4665_s16, 96, %s4669_s18, %s5470_s24  }
  0x9c   : > { %s4697_s14 = smul.u32 192, %s4406_s21  ;;  %s525_s16 = scalar_lea.vmem [#allocation10], %s5471_s29 }
  0x9d   : > { %s5472_s2 = smul.u32 96, %s4655_s12  ;;  %s532_s18 = sshll.u32 %s525_s16, 4  ;;  %s4716_s18 = int_to_ptr.vmem [resolvable:$true] %s532_s18 }
  0x9e   : > { %s4704_s30 = scalar_lea.hbm %s5440_s6, %s4697_s14  ;;  %s4710_s23 = scalar_lea.hbm %s5439_s5, %s4697_s14 }
  0x9f   : > { %s546_s19 = scalar_lea.vmem [#allocation11], %s5472_s2  ;;  %s543_s15 = scalar_lea.sflag [#allocation12], %s4652_s25 }
  0xa0   : > { %s553_s26 = sshll.u32 %s546_s19, 4  ;;  %s4120_s27 = scalar_lea.hbm %s4704_s30, 1536  ;;  %s4718_s26 = int_to_ptr.vmem [resolvable:$true] %s553_s26 }
  0xa1   : > { %p4121_p5 = scmp.ne.s32.totalorder %s4704_s30, %s4120_s27  ;;  %s4124_s24 = scalar_lea.hbm %s5440_s6, 4608 }
  0xa2   : > { %p4125_p0 = scmp.lt.u32.totalorder %s4704_s30, %s5440_s6  ;;  %p4126_p7 = scmp.lt.u32.totalorder %s4124_s24, %s4120_s27 }
  0xa3   : > { %p4122_p12 = pnand %p4121_p5, %p5498_p3  ;;  %p4128_p9 = scmp.lt.u32.totalorder %s4120_s27, %s4704_s30 }
  0xa4   : > { %p4127_p8 = por %p4126_p7, %p4125_p0 }
  0xa5   : > { %p4123_p13 = pneg %p4122_p12 }
  0xa6   : > { %p4129_p10 = por %p4128_p9, %p4127_p8 }
  0xa8   : > { %p4130_p1 = pnand %p4129_p10, %p4123_p13 }
  0xaa   : > { %4133 = shalt.err (!%p4130_p1)
}
  0xab   : > { %s4134_s19 = scalar_lea.vmem %s4718_s26, 1536  ;;  %s4416_s16 = smov [#allocation11]  }
  0xac   : > { %p4135_p4 = scmp.ne.s32.totalorder %s4718_s26, %s4134_s19  ;;  %s4138_s0 = sshll.u32 %s4416_s16, 4  ;;  %s4139_s0 = int_to_ptr.vmem [resolvable:$false] %s4138_s0 }
  0xad   : > { %s4140_s1 = scalar_lea.vmem %s4139_s0, 3072  ;;  %p4141_p11 = scmp.lt.s32.totalorder %s4718_s26, %s4139_s0 }
  0xae   : > { %p4136_p2 = pnand %p4135_p4, %p5498_p3  ;;  %p4142_p5 = scmp.lt.s32.totalorder %s4140_s1, %s4134_s19 }
  0xb0   : > { %p4137_p6 = pneg %p4136_p2  ;;  %p4143_p12 = por %p4142_p5, %p4141_p11 }
  0xb2   : > { %p4144_p0 = pnand %p4143_p12, %p4137_p6 }
  0xb4   : > { %4147 = shalt.err (!%p4144_p0)
}
  0xb5   : > { %s4417_s29 = smov 576   ;;  %s4418_s24 = smov 192  }
  0xb6   : > { %s4419_s27 = smov 12   ;;  %s4148_s13 = scalar_lea.hbm %s4710_s23, 384 }
  0xb7   : > { %3738 = dma.hbm_to_vmem [thread:$0]  (%p5498_p3), %s4704_s30, 1536, %s4718_s26, %s543_s15, %s4417_s29, %s4418_s24, %s4419_s27  }
  0xb8   : > { %p4149_p13 = scmp.ne.s32.totalorder %s4710_s23, %s4148_s13  ;;  %s4152_s0 = scalar_lea.hbm %s5439_s5, 1152 }
  0xb9   : > { %p4153_p9 = scmp.lt.u32.totalorder %s4710_s23, %s5439_s5  ;;  %p4154_p10 = scmp.lt.u32.totalorder %s4152_s0, %s4148_s13 }
  0xba   : > { %p4150_p7 = pnand %p4149_p13, %p5498_p3  ;;  %p4156_p4 = scmp.lt.u32.totalorder %s4148_s13, %s4710_s23 }
  0xbb   : > { %p4155_p1 = por %p4154_p10, %p4153_p9 }
  0xbc   : > { %p4151_p8 = pneg %p4150_p7 }
  0xbd   : > { %p4157_p2 = por %p4156_p4, %p4155_p1 }
  0xbf   : > { %p4158_p6 = pnand %p4157_p2, %p4151_p8 }
  0xc1   : > { %4161 = shalt.err (!%p4158_p6)
}
  0xc2   : > { %s4162_s26 = scalar_lea.vmem %s4716_s18, 384  ;;  %s4420_s30 = smov [#allocation10]  }
  0xc3   : > { %p4163_p11 = scmp.ne.s32.totalorder %s4716_s18, %s4162_s26  ;;  %s4166_s19 = sshll.u32 %s4420_s30, 4  ;;  %s4167_s19 = int_to_ptr.vmem [resolvable:$false] %s4166_s19 }
  0xc4   : > { %s4168_s2 = scalar_lea.vmem %s4167_s19, 768  ;;  %p4169_p0 = scmp.lt.s32.totalorder %s4716_s18, %s4167_s19 }
  0xc5   : > { %p4164_p5 = pnand %p4163_p11, %p5498_p3  ;;  %p4170_p13 = scmp.lt.s32.totalorder %s4168_s2, %s4162_s26 }
  0xc7   : > { %p4165_p12 = pneg %p4164_p5  ;;  %p4171_p7 = por %p4170_p13, %p4169_p0 }
  0xc9   : > { %p4172_p9 = pnand %p4171_p7, %p4165_p12 }
  0xcb   : > { %4175 = shalt.err (!%p4172_p9)
}
  0xcc   : > { %s5499_s13 = scalar_lea.sflag [#allocation9], %s4652_s25  ;;  %s4777_s1 = scalar_lea.hbm %s5441_s7, %s4697_s14 }
  0xcd   : > { %3737 = dma.hbm_to_vmem [thread:$0]  (%p5498_p3), %s4710_s23, 384, %s4716_s18, %s5499_s13, %s4417_s29, %s4418_s24, %s4419_s27  }
  0xce   : > { %s5500_s26 = smul.u32 384, %s4655_s12  ;;  %s4176_s2 = scalar_lea.hbm %s4777_s1, 6144 }
  0xcf   : > { %p4177_p8 = scmp.ne.s32.totalorder %s4777_s1, %s4176_s2  ;;  %s4180_s13 = scalar_lea.hbm %s5441_s7, 18432 }
  0xd0   : > { %s567_s30 = scalar_lea.vmem [#allocation13], %s5500_s26  ;;  %p4181_p4 = scmp.lt.u32.totalorder %s4777_s1, %s5441_s7 }
  0xd1   : > { %s574_s19 = sshll.u32 %s567_s30, 4  ;;  %p4178_p10 = pnand %p4177_p8, %p5498_p3  ;;  %s4781_s19 = int_to_ptr.vmem [resolvable:$true] %s574_s19 }
  0xd2   : > { %p4182_p2 = scmp.lt.u32.totalorder %s4180_s13, %s4176_s2  ;;  %p4184_p11 = scmp.lt.u32.totalorder %s4176_s2, %s4777_s1 }
  0xd3   : > { %p4179_p1 = pneg %p4178_p10 }
  0xd4   : > { %p4183_p6 = por %p4182_p2, %p4181_p4 }
  0xd6   : > { %p4185_p5 = por %p4184_p11, %p4183_p6 }
  0xd8   : > { %p4186_p12 = pnand %p4185_p5, %p4179_p1 }
  0xda   : > { %4189 = shalt.err (!%p4186_p12)
}
  0xdb   : > { %s4190_s26 = scalar_lea.vmem %s4781_s19, 6144  ;;  %s4421_s30 = smov [#allocation13]  }
  0xdc   : > { %p4191_p0 = scmp.ne.s32.totalorder %s4781_s19, %s4190_s26  ;;  %s4194_s23 = sshll.u32 %s4421_s30, 4  ;;  %s4195_s23 = int_to_ptr.vmem [resolvable:$false] %s4194_s23 }
  0xdd   : > { %s4196_s18 = scalar_lea.vmem %s4195_s23, 12288  ;;  %p4197_p9 = scmp.lt.s32.totalorder %s4781_s19, %s4195_s23 }
  0xde   : > { %p4192_p13 = pnand %p4191_p0, %p5498_p3  ;;  %p4198_p8 = scmp.lt.s32.totalorder %s4196_s18, %s4190_s26 }
  0xe0   : > { %p4193_p7 = pneg %p4192_p13  ;;  %p4199_p10 = por %p4198_p8, %p4197_p9 }
  0xe2   : > { %p4200_p4 = pnand %p4199_p10, %p4193_p7 }
  0xe4   : > { %4203 = shalt.err (!%p4200_p4)
}
  0xe5   : > { %3739 = dma.hbm_to_vmem [thread:$0]  (%p5498_p3), %s4777_s1, 6144, %s4781_s19, %s543_s15, %s4417_s29, %s4418_s24, %s4419_s27  }
  0xe6   : > { %s5501_s2 = smul.u32 96, %s4406_s21  ;;  %s585_s18 = scalar_lea.sflag [#allocation15], %s4652_s25 }
  0xe7   : > { %s5502_s26 = smul.u32 6, %s4655_s12  ;;  %s4208_s19 = scalar_lea.hbm %s5442_s8, 288 }
  0xe8   : > { %s4814_s0 = scalar_lea.hbm %s5442_s8, %s5501_s2 }
  0xe9   : > { %s588_s30 = scalar_lea.vmem [#allocation14], %s5502_s26  ;;  %s4204_s3 = scalar_lea.hbm %s4814_s0, 96 }
  0xea   : > { %s596_s23 = sshll.u32 %s588_s30, 4  ;;  %p4205_p1 = scmp.ne.s32.totalorder %s4814_s0, %s4204_s3  ;;  %s597_s23 = int_to_ptr.vmem [resolvable:$true] %s596_s23 }
  0xeb   : > { %p4209_p11 = scmp.lt.u32.totalorder %s4814_s0, %s5442_s8  ;;  %p4210_p5 = scmp.lt.u32.totalorder %s4208_s19, %s4204_s3 }
  0xec   : > { %p4206_p2 = pnand %p4205_p1, %p5498_p3  ;;  %p4212_p0 = scmp.lt.u32.totalorder %s4204_s3, %s4814_s0 }
  0xed   : > { %p4211_p12 = por %p4210_p5, %p4209_p11 }
  0xee   : > { %p4207_p6 = pneg %p4206_p2 }
  0xef   : > { %p4213_p13 = por %p4212_p0, %p4211_p12 }
  0xf1   : > { %p4214_p7 = pnand %p4213_p13, %p4207_p6 }
  0xf3   : > { %4217 = shalt.err (!%p4214_p7)
}
  0xf4   : > { %s4218_s16 = scalar_lea.vmem %s597_s23, 96  ;;  %s4422_s26 = smov [#allocation14]  }
  0xf5   : > { %p4219_p9 = scmp.ne.s32.totalorder %s597_s23, %s4218_s16  ;;  %s4222_s30 = sshll.u32 %s4422_s26, 4  ;;  %s4223_s30 = int_to_ptr.vmem [resolvable:$false] %s4222_s30 }
  0xf6   : > { %s4224_s15 = scalar_lea.vmem %s4223_s30, 192  ;;  %p4225_p4 = scmp.lt.s32.totalorder %s597_s23, %s4223_s30 }
  0xf7   : > { %p4220_p8 = pnand %p4219_p9, %p5498_p3  ;;  %p4226_p1 = scmp.lt.s32.totalorder %s4224_s15, %s4218_s16 }
  0xf9   : > { %p4221_p10 = pneg %p4220_p8  ;;  %p4227_p2 = por %p4226_p1, %p4225_p4 }
  0xfb   : > { %p4228_p5 = pnand %p4227_p2, %p4221_p10 }
  0xfd   : > { %4231 = shalt.err (!%p4228_p5)
}
  0xfe   : > { %3740 = dma.hbm_to_vmem [thread:$0]  (%p5498_p3), %s4814_s0, 96, %s597_s23, %s585_s18  }
  0xff   : > { %602 = sbr.rel (!%p5498_p3) target bundleno = 262 (0x106), region = 56 }
 0x100   : > { %s3575_s3 = smul.u32 (%p5498_p3), 12, %s4406_s21 }
 0x101   : > { %s5503_s13 = smul.u32 (%p5498_p3), 24, %s4655_s12 }
 0x102   : > { %s609_s2 = scalar_lea.vmem (%p5498_p3), %s5443_s9, %s3575_s3 }
 0x103   : > { %v624_v0 = vld [vmem:[%s609_s2] sm:$0xff] (%p5498_p3)  ;;  %v3416_v2 = vld [vmem:[%s609_s2 + $0x8] sm:$0xf] (%p5498_p3)  ;;  %s606_s16 = scalar_lea.vmem (%p5498_p3), [#allocation16], %s5503_s13  ;;  %v3418_v3 = vld [vmem:[%s609_s2 + $0x2c] sm:$0xf] (%p5498_p3) }
 0x104   : > { %v626_v1 = vld [vmem:[%s609_s2 + $0x24] sm:$0xff] (%p5498_p3)  ;;  %625 = vst [vmem:[%s606_s16] sm:$0xff] (%p5498_p3), %v624_v0  ;;  %3417 = vst [vmem:[%s606_s16 + $0x8] sm:$0xf] (%p5498_p3), %v3416_v2 }
 0x105   : > { %627 = vst [vmem:[%s606_s16 + $0xc] sm:$0xff] (%p5498_p3), %v626_v1  ;;  %3419 = vst [vmem:[%s606_s16 + $0x14] sm:$0xf] (%p5498_p3), %v3418_v3 }
 0x106 PF: > { %s4850_s26 = scalar_lea.hbm %s5444_s10, %s4697_s14  ;;  %s5504_s30 = smul.u32 96, %s4655_s12 }
 0x107   : > { %s4232_s1 = scalar_lea.hbm %s4850_s26, 1536  ;;  %p5505_p6 = scmp.ne.s32.totalorder %s5485_s28, 0 }
 0x108   : > { %s649_s15 = scalar_lea.vmem [#allocation17], %s5504_s30  ;;  %p4233_p3 = scmp.ne.s32.totalorder %s4850_s26, %s4232_s1 }
 0x109   : > { %s656_s3 = sshll.u32 %s649_s15, 4  ;;  %s4236_s13 = scalar_lea.hbm %s5444_s10, 4608  ;;  %s4854_s3 = int_to_ptr.vmem [resolvable:$true] %s656_s3 }
 0x10a   : > { %p4234_p11 = pnand %p4233_p3, %p5505_p6  ;;  %p4237_p0 = scmp.lt.u32.totalorder %s4850_s26, %s5444_s10 }
 0x10b   : > { %p4238_p13 = scmp.lt.u32.totalorder %s4236_s13, %s4232_s1  ;;  %p4240_p9 = scmp.lt.u32.totalorder %s4232_s1, %s4850_s26 }
 0x10c   : > { %p4235_p12 = pneg %p4234_p11 }
 0x10d   : > { %p4239_p7 = por %p4238_p13, %p4237_p0 }
 0x10f   : > { %p4241_p8 = por %p4240_p9, %p4239_p7 }
 0x111   : > { %p4242_p10 = pnand %p4241_p8, %p4235_p12 }
 0x113   : > { %4245 = shalt.err (!%p4242_p10)
}
 0x114   : > { %s4246_s23 = scalar_lea.vmem %s4854_s3, 1536  ;;  %s4423_s30 = smov [#allocation17]  }
 0x115   : > { %p4247_p4 = scmp.ne.s32.totalorder %s4854_s3, %s4246_s23  ;;  %s4250_s15 = sshll.u32 %s4423_s30, 4  ;;  %s4251_s15 = int_to_ptr.vmem [resolvable:$false] %s4250_s15 }
 0x116   : > { %s4252_s19 = scalar_lea.vmem %s4251_s15, 3072  ;;  %p4253_p5 = scmp.lt.s32.totalorder %s4854_s3, %s4251_s15 }
 0x117   : > { %p4248_p1 = pnand %p4247_p4, %p5505_p6  ;;  %p4254_p3 = scmp.lt.s32.totalorder %s4252_s19, %s4246_s23 }
 0x119   : > { %p4249_p2 = pneg %p4248_p1  ;;  %p4255_p11 = por %p4254_p3, %p4253_p5 }
 0x11b   : > { %p4256_p0 = pnand %p4255_p11, %p4249_p2 }
 0x11d   : > { %4259 = shalt.err (!%p4256_p0)
}
 0x11e   : > { %3741 = dma.hbm_to_vmem [thread:$0]  (%p5505_p6), %s4850_s26, 1536, %s4854_s3, %s585_s18, %s4417_s29, %s4418_s24, %s4419_s27  }
 0x11f   : > { %s4886_s13 = scalar_lea.hbm %s5445_s11, %s4697_s14  ;;  %s5506_s16 = smul.u32 384, %s4655_s12 }
 0x120   : > { %s667_s25 = scalar_lea.sflag [#allocation19], %s4655_s12  ;;  %s4260_s30 = scalar_lea.hbm %s4886_s13, 6144 }
 0x121   : > { %s670_s0 = scalar_lea.vmem [#allocation18], %s5506_s16  ;;  %p4261_p12 = scmp.ne.s32.totalorder %s4886_s13, %s4260_s30 }
 0x122   : > { %s677_s23 = sshll.u32 %s670_s0, 4  ;;  %s4264_s14 = scalar_lea.hbm %s5445_s11, 18432  ;;  %s4890_s23 = int_to_ptr.vmem [resolvable:$true] %s677_s23 }
 0x123   : > { %p4262_p13 = pnand %p4261_p12, %p5505_p6  ;;  %p4265_p9 = scmp.lt.u32.totalorder %s4886_s13, %s5445_s11 }
 0x124   : > { %p4266_p8 = scmp.lt.u32.totalorder %s4264_s14, %s4260_s30  ;;  %p4268_p4 = scmp.lt.u32.totalorder %s4260_s30, %s4886_s13 }
 0x125   : > { %p4263_p7 = pneg %p4262_p13 }
 0x126   : > { %p4267_p10 = por %p4266_p8, %p4265_p9 }
 0x128   : > { %p4269_p1 = por %p4268_p4, %p4267_p10 }
 0x12a   : > { %p4270_p2 = pnand %p4269_p1, %p4263_p7 }
 0x12c   : > { %4273 = shalt.err (!%p4270_p2)
}
 0x12d   : > { %s4274_s19 = scalar_lea.vmem %s4890_s23, 6144  ;;  %s4424_s1 = smov [#allocation18]  }
 0x12e   : > { %p4275_p5 = scmp.ne.s32.totalorder %s4890_s23, %s4274_s19  ;;  %s4278_s2 = sshll.u32 %s4424_s1, 4  ;;  %s4279_s2 = int_to_ptr.vmem [resolvable:$false] %s4278_s2 }
 0x12f   : > { %s4280_s16 = scalar_lea.vmem %s4279_s2, 12288  ;;  %p4281_p0 = scmp.lt.s32.totalorder %s4890_s23, %s4279_s2 }
 0x130   : > { %p4276_p3 = pnand %p4275_p5, %p5505_p6  ;;  %p4282_p12 = scmp.lt.s32.totalorder %s4280_s16, %s4274_s19 }
 0x132   : > { %p4277_p11 = pneg %p4276_p3  ;;  %p4283_p13 = por %p4282_p12, %p4281_p0 }
 0x134   : > { %p4284_p9 = pnand %p4283_p13, %p4277_p11 }
 0x136   : > { %4287 = shalt.err (!%p4284_p9)
}
 0x137   : > { %3742 = dma.hbm_to_vmem [thread:$0]  (%p5505_p6), %s4886_s13, 6144, %s4890_s23, %s667_s25, %s4417_s29, %s4418_s24, %s4419_s27  }
 0x138 PF: > { %p5507_p7 = scmp.ne.s32.totalorder %s5492_s17, 0 }
 0x139   : > { %p5508_p8 = scmp.eq.s32.totalorder (!%p5507_p7), %s4532_s22, 0 }
 0x13a   : > { %705 = sbr.rel (%p5507_p7) target bundleno = 819 (0x333), region = 98 }
 0x141   : > { %4361 = dma.done.wait (%p5508_p8), [#allocation3], 512   ;;  %p5509_p10 = pmov %p5508_p8 }
 0x142   : > { %p5510_p4 = pmov %p5508_p8 }
 0x143   : > { %4363 = vsyncadd (%p5509_p10), [#allocation3], 4294966784 }
 0x144   : > { %4365 = dma.done.wait (%p5510_p4), [#allocation6], 1536   ;;  %p5511_p1 = pmov %p5510_p4 }
 0x145   : > { %s5512_s28 = sld [smem:[#allocation32_spill]]  ;;  %s5513_s12 = sld [smem:[#allocation35_spill]] }
 0x146   : > { %4367 = vsyncadd (%p5511_p1), [#allocation6], 4294965760  ;;  %s719_s29 = sand.u32 1, %s4532_s22  }
 0x147   : > { %s720_s27 = scalar_lea.sflag [#allocation9], %s719_s29 }
 0x14b   : > { %s4931_s24 = sand.u32 1, %s5512_s28   ;;  %p5514_p6 = scmp.ne.s32.totalorder %s5513_s12, 0 }
 0x14c   : > { %s3726_s17 = smul.u32 6, %s4931_s24 }
 0x14e   : > { %s4934_s13 = scalar_lea.vmem [#allocation8], %s3726_s17 }
 0x14f   : > { %4369 = dma.done.wait (%p5514_p6), %s720_s27, 480  }
 0x150   : > { %4371 = vsyncadd (%p5514_p6), %s720_s27, 4294966816  ;;  %s4941_s0 = smul.u32 24, %s4931_s24  ;;  %s738_s30 = scalar_lea.sflag [#allocation12], %s719_s29 }
 0x151   : > { %s3728_s23 = smul.u32 96, %s4931_s24 }
 0x152   : > { %s4945_s25 = scalar_lea.vmem [#allocation10], %s4941_s0 }
 0x153   : > { %s4947_s18 = scalar_lea.vmem [#allocation11], %s3728_s23 }
 0x154   : > { %4373 = dma.done.wait (%p5514_p6), %s738_s30, 7680  }
 0x155   : > { %4375 = vsyncadd (%p5514_p6), %s738_s30, 4294959616  ;;  %s3729_s26 = smul.u32 384, %s4931_s24  ;;  %s756_s3 = scalar_lea.sflag [#allocation15], %s719_s29 }
 0x156   : > { %s4956_s15 = scalar_lea.vmem [#allocation14], %s3726_s17 }
 0x157   : > { %s4954_s14 = scalar_lea.vmem [#allocation13], %s3729_s26 }
 0x158   : > { %4377 = dma.done.wait (%p5514_p6), %s756_s3, 1632  }
 0x159   : > { %4379 = vsyncadd (%p5514_p6), %s756_s3, 4294965664  ;;  %s4963_s19 = scalar_lea.vmem [#allocation16], %s4941_s0  ;;  %s4965_s1 = scalar_lea.vmem [#allocation17], %s3728_s23 }
 0x15a   : > { %s781_s2 = scalar_lea.sflag [#allocation19], %s4931_s24  ;;  %s4968_s16 = scalar_lea.vmem [#allocation18], %s3729_s26 }
 0x15b   : > { %4381 = dma.done.wait (%p5514_p6), %s781_s2, 6144  }
 0x15c   : > { %4383 = vsyncadd (%p5514_p6), %s781_s2, 4294961152  ;;  %v1358_v4 = vlaneseq  ;;  %v4425_v5 = vmov 1983009808   ;;  %v4426_v7 = vmov 0.0   ;;  %v4427_v9 = vmov 0   ;;  %s5515_s29 = sld [smem:[#allocation38_spill]] }
 0x15d   : > { %v1356_v6 = vunpack.c.l.s4 %v4425_v5  ;;  %3642 = vmatprep.subr.bf16.mxu1 %v4426_v7  ;;  %1416 = vmatprep.mubr.bf16.mxu0 %v4427_v9  ;;  %vm4428_vm0 = vmmov 0   ;;  %v1321_v12 = vld [vmem:[%s4934_s13] sm:$0x3f]  ;;  %vm1374_vm1 = vcmask 1041408   ;;  %vm907_vm2 = vcmask 27648   ;;  %s5517_s13 = sld [smem:[#allocation43_spill]] }
 0x15e   : > { %v4975_v8 = vshrl.u32 %v1358_v4, 7  ;;  %3644 = vmatprep.mubr.msk.bf16.mxu1 %vm4428_vm0, %v4426_v7  ;;  %v1354_v14 = vcombine.high %v1321_v12, %v1321_v12  ;;  %v3833_v15 = vld [vmem:[%s4945_s25 + $0x4] ss:$12 sps:$4 sm:$0xff]   ;;  %vm989_vm3 = vcmask 125952   ;;  %vm1338_vm4 = vcmask 1041409   ;;  %s3578_s2 = smul.u32 384, %s4532_s22 }
 0x15f   : > { %v1357_v10 = vunpack.c.0.s8 %v1356_v6  ;;  %vm1340_vm5 = vcmask 1042434   ;;  %vm1342_vm6 = vcmask 1043459   ;;  %vm1344_vm7 = vcmask 1044484   ;;  %s5518_s12 = sld [smem:[#allocation36_spill]]  ;;  %s5519_s23 = sld [smem:[#allocation44_spill]] }
 0x160   : > { %vm1346_vm8 = vcmask 1045509   ;;  %vm1348_vm9 = vcmask 1046534   ;;  %vm1350_vm10 = vcmask 1047559   ;;  %vm1370_vm11 = vcmask 31744  }
 0x161   : > { %v4981_v11 = vsub.s32 %v1357_v10, %v4975_v8  ;;  %vm1070_vm12 = vcmask 519168   ;;  %vm1528_vm13 = vcmask 130048   ;;  %vm1175_vm14 = vcmask 1043456  }
 0x162   : > { %v899_v16 = vld [vmem:[%s5515_s29] sm:$0xf]  ;;  %v900_v17 = vld [vmem:[%s5515_s29 + $0x4] sm:$0xf]  ;;  %v901_v18 = vld [vmem:[%s5515_s29 + $0x8] sm:$0xf] }
 0x163   : > { %v1361_v13 = vrot.slane %v1321_v12, %v4981_v11  ;;  %v902_v19 = vld [vmem:[%s5515_s29 + $0xc] sm:$0xf]  ;;  %v1368_v22 = vrot.slane %v1354_v14, %v4981_v11  ;;  %v903_v23 = vld [vmem:[%s5515_s29 + $0x10] sm:$0xf]  ;;  %v904_v24 = vld [vmem:[%s5515_s29 + $0x14] sm:$0xf] }
 0x164   : > { %v908_v25 = vsel %vm907_vm2, %v899_v16, 0.0  ;;  %v905_v26 = vld [vmem:[%s5515_s29 + $0x18] sm:$0xf]  ;;  %v906_v27 = vld [vmem:[%s5515_s29 + $0x1c] sm:$0xf]  ;;  %v915_v29 = vsel %vm907_vm2, %v900_v17, 0.0 }
 0x165   : > { %v1369_v20 = vcombine.high %v1361_v13, %v1361_v13  ;;  %v1376_v21 = vsel %vm1374_vm1, %v1361_v13, 0  ;;  %v909_v28 = vrot.slane %v908_v25, 4  ;;  %v1382_v30 = vsel %vm1374_vm1, %v1368_v22, 0  ;;  %s5357_s30 = scalar_lea.hbm %s5519_s23, %s3578_s2  ;;  %p5520_p3 = scmp.ne.s32.totalorder %s5518_s12, 0 }
 0x166   : > { %v916_v31 = vrot.slane %v915_v29, 4  ;;  %v922_v32 = vsel %vm907_vm2, %v901_v18, 0.0  ;;  %v929_v33 = vsel %vm907_vm2, %v902_v19, 0.0  ;;  %3643 = vmatpush3.bf16.msra.mxu1 %v1382_v30  ;;  %v936_v37 = vsel %vm907_vm2, %v903_v23, 0.0  ;;  %v981_v30 = vld [vmem:[#allocation2] sm:$0xf] }
 0x167   : > { %3426 = vmatprep.subr.msk.bf16.mxu0 %vm1374_vm1, %v1369_v20  ;;  %v910_v34 = vadd.f32 %v909_v28, %v908_v25  ;;  %v923_v35 = vrot.slane %v922_v32, 4  ;;  %v930_v36 = vrot.slane %v929_v33, 4  ;;  %v937_v39 = vrot.slane %v936_v37, 4  ;;  %3648 = vmatprep.subr.bf16.mxu1 %v4426_v7 }
 0x168   : > { %1385 = vmatpush1.bf16.msra.mxu0 %v1376_v21  ;;  %v917_v38 = vadd.f32 %v916_v31, %v915_v29  ;;  %v943_v40 = vsel %vm907_vm2, %v904_v24, 0.0  ;;  %v950_v41 = vsel %vm907_vm2, %v905_v26, 0.0  ;;  %v957_v49 = vsel %vm907_vm2, %v906_v27, 0.0 }
 0x169   : > { %1532 = vmatprep.subr.bf16.mxu0 %v3833_v15  ;;  %v911_v42 = vrot.slane %v910_v34, 2  ;;  %v924_v43 = vadd.f32 %v923_v35, %v922_v32  ;;  %v931_v44 = vadd.f32 %v930_v36, %v929_v33  ;;  %v944_v45 = vrot.slane %v943_v40, 4  ;;  %v982_v35 = vld [vmem:[#allocation2 + $0x4] sm:$0xf] }
 0x16a   : > { %v918_v46 = vrot.slane %v917_v38, 2  ;;  %v938_v47 = vadd.f32 %v937_v39, %v936_v37  ;;  %v951_v48 = vrot.slane %v950_v41, 4  ;;  %v958_v57 = vrot.slane %v957_v49, 4 }
 0x16b   : > { %v912_v50 = vadd.f32 %v911_v42, %v910_v34  ;;  %v925_v51 = vrot.slane %v924_v43, 2  ;;  %v932_v52 = vrot.slane %v931_v44, 2  ;;  %v945_v53 = vadd.f32 %v944_v45, %v943_v40 }
 0x16c   : > { %v919_v54 = vadd.f32 %v918_v46, %v917_v38  ;;  %v939_v55 = vrot.slane %v938_v47, 2  ;;  %v952_v56 = vadd.f32 %v951_v48, %v950_v41  ;;  %v959_v1 = vadd.f32 %v958_v57, %v957_v49  ;;  %v984_v49 = vld [vmem:[#allocation2 + $0xc] sm:$0xf] }
 0x16d   : > { %v913_v58 = vrot.slane %v912_v50, 1  ;;  %v926_v59 = vadd.f32 %v925_v51, %v924_v43  ;;  %v933_v60 = vadd.f32 %v932_v52, %v931_v44  ;;  %v946_v61 = vrot.slane %v945_v53, 2  ;;  %v983_v43 = vld [vmem:[#allocation2 + $0x8] sm:$0xf]  ;;  %v985_v52 = vld [vmem:[#allocation2 + $0x10] sm:$0xf] }
 0x16e   : > { %v920_v62 = vrot.slane %v919_v54, 1  ;;  %v940_v63 = vadd.f32 %v939_v55, %v938_v47  ;;  %v953_v0 = vrot.slane %v952_v56, 2  ;;  %v960_v13 = vrot.slane %v959_v1, 2 }
 0x16f   : > { %v914_v2 = vadd.f32 %v913_v58, %v912_v50  ;;  %v927_v3 = vrot.slane %v926_v59, 1  ;;  %v934_v4 = vrot.slane %v933_v60, 1  ;;  %v947_v5 = vadd.f32 %v946_v61, %v945_v53 }
 0x170   : > { %v921_v6 = vadd.f32 %v920_v62, %v919_v54  ;;  %v941_v10 = vrot.slane %v940_v63, 1  ;;  %v954_v12 = vadd.f32 %v953_v0, %v952_v56  ;;  %v961_v20 = vadd.f32 %v960_v13, %v959_v1 }
 0x171   : > { %v928_v14 = vadd.f32 %v927_v3, %v926_v59  ;;  %v935_v15 = vadd.f32 %v934_v4, %v933_v60  ;;  %v948_v16 = vrot.slane %v947_v5, 1  ;;  %v965_v17 = vmul.f32 0.25, %v914_v2  ;;  %v3834_v2 = vld [vmem:[%s4945_s25 + $0x8] ss:$12 sps:$4 sm:$0xff]  }
 0x172   : > { %v942_v18 = vadd.f32 %v941_v10, %v940_v63  ;;  %v955_v19 = vrot.slane %v954_v12, 1  ;;  %v966_v21 = vmul.f32 0.25, %v921_v6  ;;  %v962_v27 = vrot.slane %v961_v20, 1  ;;  %v3831_v63 = vld [vmem:[%s4945_s25] ss:$12 sps:$4 sm:$0xff]   ;;  %s886_s25 = smul.u32 3, %s4532_s22 }
 0x173   : > { %v949_v22 = vadd.f32 %v948_v16, %v947_v5  ;;  %v967_v23 = vmul.f32 0.25, %v928_v14  ;;  %v968_v24 = vmul.f32 0.25, %v935_v15  ;;  %v973_v25 = vpack.c.bf16 %v965_v17, %v965_v17  ;;  %v986_v3 = vld [vmem:[#allocation2 + $0x14] sm:$0xf]  ;;  %v3835_v10 = vld [vmem:[%s4954_s14 + $0xc8] ss:$12 sps:$4 sm:$0xff]  }
 0x174   : > { %v956_v26 = vadd.f32 %v955_v19, %v954_v12  ;;  %v969_v28 = vmul.f32 0.25, %v942_v18  ;;  %v974_v29 = vpack.c.bf16 %v966_v21, %v966_v21  ;;  %v963_v36 = vadd.f32 %v962_v27, %v961_v20  ;;  %v987_v12 = vld [vmem:[#allocation2 + $0x18] sm:$0xf]  ;;  %v988_v17 = vld [vmem:[#allocation2 + $0x1c] sm:$0xf]  ;;  %p887_p2 = scmp.lt.s32.totalorder %s886_s25, 8 }
 0x175   : > { %v970_v31 = vmul.f32 0.25, %v949_v22  ;;  %v975_v32 = vpack.c.bf16 %v967_v23, %v967_v23  ;;  %v976_v33 = vpack.c.bf16 %v968_v24, %v968_v24  ;;  %v1330_v34 = vunpack.c.l.b16 %v973_v25  ;;  %v3839_v25 = vld [vmem:[%s4947_s18 + $0x4] ss:$12 sps:$4 sm:$0xff]  }
 0x176   : > { %v971_v37 = vmul.f32 0.25, %v956_v26  ;;  %v977_v38 = vpack.c.bf16 %v969_v28, %v969_v28  ;;  %v1331_v39 = vunpack.c.l.b16 %v974_v29  ;;  %v990_v44 = vsel %vm989_vm3, %v981_v30, 0.0  ;;  %s5532_s25 = smov (!%p887_p2, %s886_s25), 8 }
 0x177   : > { %v978_v40 = vpack.c.bf16 %v970_v31, %v970_v31  ;;  %v1332_v41 = vunpack.c.l.b16 %v975_v32  ;;  %v1333_v42 = vunpack.c.l.b16 %v976_v33  ;;  %v972_v45 = vmul.f32 0.25, %v963_v36  ;;  %s894_s3 = scalar_lea.vmem %s5517_s13, %s5532_s25 }
 0x178   : > { %v979_v46 = vpack.c.bf16 %v971_v37, %v971_v37  ;;  %v1334_v47 = vunpack.c.l.b16 %v977_v38  ;;  %v1339_v48 = vsel %vm1338_vm4, %v1331_v39, %v1330_v34  ;;  %v991_v53 = vrot.slane %v990_v44, 4 }
 0x179   : > { %v1335_v50 = vunpack.c.l.b16 %v978_v40  ;;  %v1341_v51 = vsel %vm1340_vm5, %v1332_v41, %v1339_v48  ;;  %v997_v54 = vsel %vm989_vm3, %v982_v35, 0.0  ;;  %v980_v55 = vpack.c.bf16 %v972_v45, %v972_v45 }
 0x17a   : > { %v1336_v56 = vunpack.c.l.b16 %v979_v46  ;;  %v1343_v57 = vsel %vm1342_vm6, %v1333_v42, %v1341_v51  ;;  %v998_v58 = vrot.slane %v997_v54, 4  ;;  %v992_v60 = vadd.f32 %v991_v53, %v990_v44 }
 0x17b   : > { %v1345_v59 = vsel %vm1344_vm7, %v1334_v47, %v1343_v57  ;;  %v1004_v61 = vsel %vm989_vm3, %v983_v43, 0.0  ;;  %v1011_v62 = vsel %vm989_vm3, %v984_v49, 0.0  ;;  %v1337_v0 = vunpack.c.l.b16 %v980_v55 }
 0x17c   : > { %v1347_v1 = vsel %vm1346_vm8, %v1335_v50, %v1345_v59  ;;  %v999_v4 = vadd.f32 %v998_v58, %v997_v54  ;;  %v1005_v5 = vrot.slane %v1004_v61, 4  ;;  %v993_v13 = vrot.slane %v992_v60, 2 }
 0x17d   : > { %v1349_v6 = vsel %vm1348_vm9, %v1336_v56, %v1347_v1  ;;  %v1012_v14 = vrot.slane %v1011_v62, 4  ;;  %v1018_v15 = vsel %vm989_vm3, %v985_v52, 0.0  ;;  %v1025_v24 = vsel %vm989_vm3, %v986_v3, 0.0 }
 0x17e   : > { %v1351_v16 = vsel %vm1350_vm10, %v1337_v0, %v1349_v6  ;;  %v1000_v18 = vrot.slane %v999_v4, 2  ;;  %v1006_v19 = vadd.f32 %v1005_v5, %v1004_v61  ;;  %v1019_v20 = vrot.slane %v1018_v15, 4 }
 0x17f   : > { %v5038_v21 = vpack.c.b16 %v1351_v16, %v1351_v16  ;;  %v994_v22 = vadd.f32 %v993_v13, %v992_v60  ;;  %v1013_v23 = vadd.f32 %v1012_v14, %v1011_v62  ;;  %v1026_v29 = vrot.slane %v1025_v24, 4  ;;  %v1062_v62 = vld [vmem:[#allocation5] sm:$0xf] }
 0x180   : > { %v1001_v26 = vadd.f32 %v1000_v18, %v999_v4  ;;  %v1007_v27 = vrot.slane %v1006_v19, 2  ;;  %v1020_v28 = vadd.f32 %v1019_v20, %v1018_v15  ;;  %v1032_v32 = vsel %vm989_vm3, %v987_v12, 0.0  ;;  %v1064_v20 = vld [vmem:[#allocation5 + $0x8] sm:$0xf] }
 0x181   : > { %3427 = vmatmul.mubr.msk.bf16.vlgmr.msra.gmra.mrb[0].mxu0 %vm1370_vm11, %v5038_v21  ;;  %3645 = vmatmul.mubr.msk.bf16.vlgmr.msra.gmra.mrb[0].mxu1 %vm1370_vm11, %v5038_v21  ;;  %v995_v30 = vrot.slane %v994_v22, 1  ;;  %v1014_v31 = vrot.slane %v1013_v23, 2  ;;  %v1039_v33 = vsel %vm989_vm3, %v988_v17, 0.0  ;;  %v1027_v37 = vadd.f32 %v1026_v29, %v1025_v24 }
 0x182   : > { %1533 = vmatpush1.bf16.msra.mxu0 %v3831_v63  ;;  %3649 = vmatpush3.bf16.msra.mxu1 %v3834_v2  ;;  %v1002_v34 = vrot.slane %v1001_v26, 1  ;;  %v1008_v35 = vadd.f32 %v1007_v27, %v1006_v19  ;;  %v1021_v36 = vrot.slane %v1020_v28, 2  ;;  %v1033_v40 = vrot.slane %v1032_v32, 4 }
 0x183   : > { %3650 = vmatprep.mubr.msk.bf16.mxu1 %vm4428_vm0, %v4426_v7  ;;  %3589 = vmatprep.subr.bf16.mxu1 %v3835_v10  ;;  %v996_v38 = vadd.f32 %v995_v30, %v994_v22  ;;  %v1015_v39 = vadd.f32 %v1014_v31, %v1013_v23  ;;  %v1040_v41 = vrot.slane %v1039_v33, 4  ;;  %v1028_v45 = vrot.slane %v1027_v37, 2  ;;  %v1063_v10 = vld [vmem:[#allocation5 + $0x4] sm:$0xf] }
 0x184   : > { %v1003_v42 = vadd.f32 %v1002_v34, %v1001_v26  ;;  %v1009_v43 = vrot.slane %v1008_v35, 1  ;;  %v1022_v44 = vadd.f32 %v1021_v36, %v1020_v28  ;;  %1564 = vmatprep.mubr.bf16.mxu0 %v4427_v9  ;;  %1724 = vmatprep.subr.bf16.mxu0 %v3839_v25  ;;  %v1034_v47 = vadd.f32 %v1033_v40, %v1032_v32  ;;  %v1065_v25 = vld [vmem:[#allocation5 + $0xc] sm:$0xf]  ;;  %v1066_v34 = vld [vmem:[#allocation5 + $0x10] sm:$0xf] }
 0x185   : > { %v1016_v46 = vrot.slane %v1015_v39, 1  ;;  %v1041_v48 = vadd.f32 %v1040_v41, %v1039_v33  ;;  %v1046_v49 = vmul.f32 0.25, %v996_v38  ;;  %v1029_v52 = vadd.f32 %v1028_v45, %v1027_v37  ;;  %v1067_v38 = vld [vmem:[#allocation5 + $0x14] sm:$0xf] }
 0x186   : > { %v1010_v50 = vadd.f32 %v1009_v43, %v1008_v35  ;;  %v1023_v51 = vrot.slane %v1022_v44, 1  ;;  %v1047_v53 = vmul.f32 0.25, %v1003_v42  ;;  %v1035_v55 = vrot.slane %v1034_v47, 2 }
 0x187   : > { %v1017_v54 = vadd.f32 %v1016_v46, %v1015_v39  ;;  %v1042_v56 = vrot.slane %v1041_v48, 2  ;;  %v1054_v57 = vpack.c.bf16 %v1046_v49, %v1046_v49  ;;  %v1030_v59 = vrot.slane %v1029_v52, 1 }
 0x188   : > { %v1024_v58 = vadd.f32 %v1023_v51, %v1022_v44  ;;  %v1048_v60 = vmul.f32 0.25, %v1010_v50  ;;  %v1055_v61 = vpack.c.bf16 %v1047_v53, %v1047_v53  ;;  %v1036_v63 = vadd.f32 %v1035_v55, %v1034_v47 }
 0x189   : > { %v1043_v0 = vadd.f32 %v1042_v56, %v1041_v48  ;;  %v1049_v1 = vmul.f32 0.25, %v1017_v54  ;;  %v1496_v2 = vunpack.c.l.b16 %v1054_v57  ;;  %v1031_v3 = vadd.f32 %v1030_v59, %v1029_v52 }
 0x18a   : > { %v1050_v4 = vmul.f32 0.25, %v1024_v58  ;;  %v1056_v5 = vpack.c.bf16 %v1048_v60, %v1048_v60  ;;  %v1497_v6 = vunpack.c.l.b16 %v1055_v61  ;;  %v1037_v12 = vrot.slane %v1036_v63, 1  ;;  %v1068_v58 = vld [vmem:[#allocation5 + $0x18] sm:$0xf] }
 0x18b   : > { %v1044_v13 = vrot.slane %v1043_v0, 1  ;;  %v1057_v14 = vpack.c.bf16 %v1049_v1, %v1049_v1  ;;  %v1071_v15 = vsel %vm1070_vm12, %v1062_v62, 0.0  ;;  %v1051_v16 = vmul.f32 0.25, %v1031_v3  ;;  %v1069_v1 = vld [vmem:[#allocation5 + $0x1c] sm:$0xf] }
 0x18c   : > { %v1058_v17 = vpack.c.bf16 %v1050_v4, %v1050_v4  ;;  %v1498_v18 = vunpack.c.l.b16 %v1056_v5  ;;  %v1504_v19 = vsel %vm1338_vm4, %v1497_v6, %v1496_v2  ;;  %v1038_v22 = vadd.f32 %v1037_v12, %v1036_v63  ;;  %v3836_v63 = vld [vmem:[%s4954_s14 + $0x8] ss:$12 sps:$4 sm:$0xff]   ;;  %v3840_v6 = vld [vmem:[%s4954_s14 + $0xe0] ss:$12 sps:$4 sm:$0xff]  }
 0x18d   : > { %v1045_v23 = vadd.f32 %v1044_v13, %v1043_v0  ;;  %v1499_v24 = vunpack.c.l.b16 %v1057_v14  ;;  %v1072_v26 = vrot.slane %v1071_v15, 4  ;;  %v1059_v27 = vpack.c.bf16 %v1051_v16, %v1051_v16  ;;  %v3837_v0 = vld [vmem:[%s4947_s18] ss:$12 sps:$4 sm:$0xff]  }
 0x18e   : > { %v1500_v28 = vunpack.c.l.b16 %v1058_v17  ;;  %v1505_v29 = vsel %vm1340_vm5, %v1498_v18, %v1504_v19  ;;  %v1078_v30 = vsel %vm1070_vm12, %v1063_v10, 0.0  ;;  %v1052_v31 = vmul.f32 0.25, %v1038_v22  ;;  %v3844_v10 = vld [vmem:[%s4947_s18 + $0x1c] ss:$12 sps:$4 sm:$0xff]   ;;  %v3841_v19 = vld [vmem:[%s4954_s14 + $0x20] ss:$12 sps:$4 sm:$0xff]  }
 0x18f   : > { %v1053_v32 = vmul.f32 0.25, %v1045_v23  ;;  %v1506_v33 = vsel %vm1342_vm6, %v1499_v24, %v1505_v29  ;;  %v1073_v35 = vadd.f32 %v1072_v26, %v1071_v15  ;;  %v1501_v36 = vunpack.c.l.b16 %v1059_v27  ;;  %v3845_v26 = vld [vmem:[%s4954_s14 + $0xf8] ss:$12 sps:$4 sm:$0xff]  }
 0x190   : > { %v1507_v37 = vsel %vm1344_vm7, %v1500_v28, %v1506_v33  ;;  %v1079_v39 = vrot.slane %v1078_v30, 4  ;;  %v1085_v40 = vsel %vm1070_vm12, %v1064_v20, 0.0  ;;  %v1060_v41 = vpack.c.bf16 %v1052_v31, %v1052_v31  ;;  %v3849_v31 = vld [vmem:[%s4947_s18 + $0x34] ss:$12 sps:$4 sm:$0xff]  }
 0x191   : > { %v1061_v42 = vpack.c.bf16 %v1053_v32, %v1053_v32  ;;  %v1074_v43 = vrot.slane %v1073_v35, 2  ;;  %v1086_v44 = vrot.slane %v1085_v40, 4  ;;  %v1508_v45 = vsel %vm1346_vm8, %v1501_v36, %v1507_v37 }
 0x192   : > { %v1080_v46 = vadd.f32 %v1079_v39, %v1078_v30  ;;  %v1092_v47 = vsel %vm1070_vm12, %v1065_v25, 0.0  ;;  %v1099_v48 = vsel %vm1070_vm12, %v1066_v34, 0.0  ;;  %v1502_v49 = vunpack.c.l.b16 %v1060_v41  ;;  %v3842_v25 = vld [vmem:[%s4947_s18 + $0x18] ss:$12 sps:$4 sm:$0xff]  }
 0x193   : > { %v1503_v50 = vunpack.c.l.b16 %v1061_v42  ;;  %v1075_v51 = vadd.f32 %v1074_v43, %v1073_v35  ;;  %v1087_v52 = vadd.f32 %v1086_v44, %v1085_v40  ;;  %v1093_v54 = vrot.slane %v1092_v47, 4  ;;  %v3846_v40 = vld [vmem:[%s4954_s14 + $0x38] ss:$12 sps:$4 sm:$0xff]  }
 0x194   : > { %v1081_v53 = vrot.slane %v1080_v46, 2  ;;  %v1100_v55 = vrot.slane %v1099_v48, 4  ;;  %v1106_v56 = vsel %vm1070_vm12, %v1067_v38, 0.0  ;;  %v1509_v57 = vsel %vm1348_vm9, %v1502_v49, %v1508_v45  ;;  %v3847_v45 = vld [vmem:[%s4947_s18 + $0x30] ss:$12 sps:$4 sm:$0xff]  }
 0x195   : > { %v1076_v59 = vrot.slane %v1075_v51, 1  ;;  %v1088_v60 = vrot.slane %v1087_v52, 2  ;;  %v1107_v61 = vrot.slane %v1106_v56, 4  ;;  %v1510_v62 = vsel %vm1350_vm10, %v1503_v50, %v1509_v57  ;;  %v5083_v50 = vld [vmem:[#allocation7] sm:$0xff]  ;;  %v5087_v57 = vld [vmem:[#allocation7 + $0x8] sm:$0xff] }
 0x196   : > { %v1082_v2 = vadd.f32 %v1081_v53, %v1080_v46  ;;  %v1094_v3 = vadd.f32 %v1093_v54, %v1092_v47  ;;  %v1101_v4 = vadd.f32 %v1100_v55, %v1099_v48  ;;  %v5066_v5 = vpack.c.b16 %v1510_v62, %v1510_v62 }
 0x197   : > { %v1077_v12 = vadd.f32 %v1076_v59, %v1075_v51  ;;  %v1089_v13 = vadd.f32 %v1088_v60, %v1087_v52  ;;  %v1108_v14 = vadd.f32 %v1107_v61, %v1106_v56  ;;  %v1113_v18 = vsel %vm1070_vm12, %v1068_v58, 0.0  ;;  %v3850_v51 = vld [vmem:[%s4954_s14 + $0x110] ss:$12 sps:$4 sm:$0xff]   ;;  %v3854_v52 = vld [vmem:[%s4947_s18 + $0x4c] ss:$12 sps:$4 sm:$0xff]  }
 0x198   : > { %v1083_v15 = vrot.slane %v1082_v2, 1  ;;  %v1095_v16 = vrot.slane %v1094_v3, 2  ;;  %v1102_v17 = vrot.slane %v1101_v4, 2  ;;  %3651 = vmatmul.mubr.msk.bf16.vlgmr.msra.gmra.mrb[4].mxu1 %vm1528_vm13, %v5066_v5  ;;  %3432 = vmatmul.mubr.msk.bf16.vlgmr.msra.gmra.mrb[0].mxu0 %vm1528_vm13, %v5066_v5  ;;  %v1114_v23 = vrot.slane %v1113_v18, 4  ;;  %v3851_v58 = vld [vmem:[%s4954_s14 + $0x50] ss:$12 sps:$4 sm:$0xff]  }
 0x199   : > { %v1090_v20 = vrot.slane %v1089_v13, 1  ;;  %v1109_v22 = vrot.slane %v1108_v14, 2  ;;  %v1120_v24 = vsel %vm1070_vm12, %v1069_v1, 0.0  ;;  %3590 = vmatpush3.bf16.msra.mxu1 %v3836_v63  ;;  %1725 = vmatpush1.bf16.msra.mxu0 %v3837_v0  ;;  %v1127_v35 = vmul.f32 0.25, %v1077_v12  ;;  %v3852_v59 = vld [vmem:[%s4947_s18 + $0x48] ss:$12 sps:$4 sm:$0xff]  }
 0x19a   : > { %v1084_v27 = vadd.f32 %v1083_v15, %v1082_v2  ;;  %v1096_v28 = vadd.f32 %v1095_v16, %v1094_v3  ;;  %v1103_v29 = vadd.f32 %v1102_v17, %v1101_v4  ;;  %v1121_v30 = vrot.slane %v1120_v24, 4  ;;  %3591 = vmatprep.subr.bf16.mxu1 %v3840_v6  ;;  %1726 = vmatprep.subr.bf16.mxu0 %v3844_v10  ;;  %v5091_v3 = vld [vmem:[#allocation7 + $0x10] sm:$0xff]  ;;  %v5093_v4 = vld [vmem:[#allocation7 + $0x18] sm:$0xff] }
 0x19b   : > { %v1091_v32 = vadd.f32 %v1090_v20, %v1089_v13  ;;  %v1110_v33 = vadd.f32 %v1109_v22, %v1108_v14  ;;  %v1115_v34 = vadd.f32 %v1114_v23, %v1113_v18  ;;  %1756 = vmatprep.mubr.bf16.mxu0 %v4427_v9  ;;  %v1135_v44 = vpack.c.bf16 %v1127_v35, %v1127_v35  ;;  %v3855_v10 = vld [vmem:[%s4954_s14 + $0x128] ss:$12 sps:$4 sm:$0xff]   ;;  %v5102_v20 = vld [vmem:[#allocation7 + $0x28] sm:$0xff] }
 0x19c   : > { %v1097_v36 = vrot.slane %v1096_v28, 1  ;;  %v1104_v37 = vrot.slane %v1103_v29, 1  ;;  %v1122_v38 = vadd.f32 %v1121_v30, %v1120_v24  ;;  %v1128_v39 = vmul.f32 0.25, %v1084_v27  ;;  %v5109_v30 = vld [vmem:[#allocation7 + $0x38] sm:$0xff] }
 0x19d   : > { %v1111_v41 = vrot.slane %v1110_v33, 1  ;;  %v1116_v42 = vrot.slane %v1115_v34, 2  ;;  %v1129_v43 = vmul.f32 0.25, %v1091_v32  ;;  %3592 = vmatpush3.bf16.msra.mxu1 %v3841_v19  ;;  %1727 = vmatpush1.bf16.msra.mxu0 %v3842_v25  ;;  %v1640_v56 = vunpack.c.l.b16 %v1135_v44  ;;  %v5100_v19 = vld [vmem:[#allocation7 + $0x20] sm:$0xff] }
 0x19e   : > { %v1098_v46 = vadd.f32 %v1097_v36, %v1096_v28  ;;  %v1105_v47 = vadd.f32 %v1104_v37, %v1103_v29  ;;  %v1123_v48 = vrot.slane %v1122_v38, 2  ;;  %v1136_v49 = vpack.c.bf16 %v1128_v39, %v1128_v39  ;;  %3593 = vmatprep.subr.bf16.mxu1 %v3845_v26  ;;  %1728 = vmatprep.subr.bf16.mxu0 %v3849_v31  ;;  %v5105_v26 = vld [vmem:[#allocation7 + $0x30] sm:$0xff] }
 0x19f   : > { %v1112_v53 = vadd.f32 %v1111_v41, %v1110_v33  ;;  %v1117_v54 = vadd.f32 %v1116_v42, %v1115_v34  ;;  %v1137_v55 = vpack.c.bf16 %v1129_v43, %v1129_v43  ;;  %v1159_v6 = vcombine.high %v5083_v50, %v5083_v50  ;;  %v3856_v33 = vld [vmem:[%s4954_s14 + $0x68] ss:$12 sps:$4 sm:$0xff]  }
 0x1a0   : > { %v1124_v60 = vadd.f32 %v1123_v48, %v1122_v38  ;;  %v1130_v61 = vmul.f32 0.25, %v1098_v46  ;;  %v1131_v62 = vmul.f32 0.25, %v1105_v47  ;;  %v1641_v63 = vunpack.c.l.b16 %v1136_v49  ;;  %v3857_v38 = vld [vmem:[%s4954_s14 + $0x140] ss:$12 sps:$4 sm:$0xff]  }
 0x1a1   : > { %v1118_v0 = vrot.slane %v1117_v54, 1  ;;  %v1132_v1 = vmul.f32 0.25, %v1112_v53  ;;  %v1642_v2 = vunpack.c.l.b16 %v1137_v55  ;;  %3594 = vmatpush3.bf16.msra.mxu1 %v3846_v40  ;;  %1729 = vmatpush1.bf16.msra.mxu0 %v3847_v45  ;;  %v1183_v22 = vsel %vm1175_vm14, %v1159_v6, 0.0  ;;  %v3859_v53 = vld [vmem:[%s4954_s14 + $0x80] ss:$12 sps:$4 sm:$0xff]  }
 0x1a2   : > { %v1125_v12 = vrot.slane %v1124_v60, 1  ;;  %v1138_v13 = vpack.c.bf16 %v1130_v61, %v1130_v61  ;;  %v1139_v14 = vpack.c.bf16 %v1131_v62, %v1131_v62  ;;  %v1648_v15 = vsel %vm1338_vm4, %v1641_v63, %v1640_v56  ;;  %3595 = vmatprep.subr.bf16.mxu1 %v3850_v51  ;;  %1730 = vmatprep.subr.bf16.mxu0 %v3854_v52 }
 0x1a3   : > { %v1119_v16 = vadd.f32 %v1118_v0, %v1117_v54  ;;  %v1140_v17 = vpack.c.bf16 %v1132_v1, %v1132_v1  ;;  %v1649_v18 = vsel %vm1340_vm5, %v1642_v2, %v1648_v15  ;;  %vm1720_vm15 = vcmask 523264   ;;  %v3858_v0 = vld [vmem:[%s4947_s18 + $0x8] ss:$12 sps:$4 sm:$0xff]  }
 0x1a4   : > { %v1126_v23 = vadd.f32 %v1125_v12, %v1124_v60  ;;  %v1643_v24 = vunpack.c.l.b16 %v1138_v13  ;;  %v1644_v25 = vunpack.c.l.b16 %v1139_v14  ;;  %v1160_v27 = vcombine.high %v5087_v57, %v5087_v57  ;;  %v3862_v12 = vld [vmem:[%s4954_s14 + $0x98] ss:$12 sps:$4 sm:$0xff]  }
 0x1a5   : > { %v1133_v28 = vmul.f32 0.25, %v1119_v16  ;;  %v1645_v29 = vunpack.c.l.b16 %v1140_v17  ;;  %v1161_v31 = vcombine.high %v5091_v3, %v5091_v3  ;;  %v1162_v32 = vcombine.high %v5093_v4, %v5093_v4  ;;  %3596 = vmatpush3.bf16.msra.mxu1 %v3851_v58  ;;  %1731 = vmatpush1.bf16.msra.mxu0 %v3852_v59  ;;  %v3860_v59 = vld [vmem:[%s4954_s14 + $0x158] ss:$12 sps:$4 sm:$0xff]  }
 0x1a6   : > { %v1134_v34 = vmul.f32 0.25, %v1126_v23  ;;  %v1650_v35 = vsel %vm1342_vm6, %v1643_v24, %v1649_v18  ;;  %v1163_v36 = vcombine.high %v5100_v19, %v5100_v19  ;;  %v1164_v37 = vcombine.high %v5102_v20, %v5102_v20  ;;  %3597 = vmatprep.subr.bf16.mxu1 %v3855_v10  ;;  %3654 = vmatprep.subr.bf16.mxu0 %v4426_v7  ;;  %v3863_v23 = vld [vmem:[%s4954_s14 + $0x170] ss:$12 sps:$4 sm:$0xff]  }
 0x1a7   : > { %v1141_v39 = vpack.c.bf16 %v1133_v28, %v1133_v28  ;;  %v1651_v40 = vsel %vm1344_vm7, %v1644_v25, %v1650_v35  ;;  %v1165_v41 = vcombine.high %v5105_v26, %v5105_v26  ;;  %v1184_v42 = vrot.slane %v1183_v22, 4 }
 0x1a8   : > { %v1142_v43 = vpack.c.bf16 %v1134_v34, %v1134_v34  ;;  %v1652_v44 = vsel %vm1346_vm8, %v1645_v29, %v1651_v40  ;;  %v1166_v45 = vcombine.high %v5109_v30, %v5109_v30  ;;  %v1197_v46 = vsel %vm1175_vm14, %v1160_v27, 0.0  ;;  %v3861_v29 = vld [vmem:[%s4947_s18 + $0x20] ss:$12 sps:$4 sm:$0xff]  }
 0x1a9   : > { %v1646_v47 = vunpack.c.l.b16 %v1141_v39  ;;  %v1185_v48 = vadd.f32 %v1184_v42, %v1183_v22  ;;  %v1198_v49 = vrot.slane %v1197_v46, 4  ;;  %v1211_v51 = vsel %vm1175_vm14, %v1161_v31, 0.0  ;;  %3598 = vmatpush3.bf16.msra.mxu1 %v3856_v33  ;;  %v3865_v39 = vld [vmem:[%s4954_s14 + $0xb0] ss:$12 sps:$4 sm:$0xff]  }
 0x1aa   : > { %v1647_v52 = vunpack.c.l.b16 %v1142_v43  ;;  %v1212_v54 = vrot.slane %v1211_v51, 4  ;;  %v1225_v55 = vsel %vm1175_vm14, %v1162_v32, 0.0  ;;  %v1239_v56 = vsel %vm1175_vm14, %v1163_v36, 0.0  ;;  %3599 = vmatprep.subr.bf16.mxu1 %v3857_v38 }
 0x1ab   : > { %v1653_v58 = vsel %vm1348_vm9, %v1646_v47, %v1652_v44  ;;  %v1186_v60 = vrot.slane %v1185_v48, 2  ;;  %v1199_v61 = vadd.f32 %v1198_v49, %v1197_v46  ;;  %v1226_v62 = vrot.slane %v1225_v55, 4 }
 0x1ac   : > { %v1654_v63 = vsel %vm1350_vm10, %v1647_v52, %v1653_v58  ;;  %v1213_v1 = vadd.f32 %v1212_v54, %v1211_v51  ;;  %v1240_v2 = vrot.slane %v1239_v56, 4  ;;  %v1253_v6 = vsel %vm1175_vm14, %v1164_v37, 0.0 }
 0x1ad   : > { %v5139_v10 = vpack.c.b16 %v1654_v63, %v1654_v63  ;;  %v1187_v13 = vadd.f32 %v1186_v60, %v1185_v48  ;;  %v1200_v14 = vrot.slane %v1199_v61, 2  ;;  %v1227_v15 = vadd.f32 %v1226_v62, %v1225_v55  ;;  %3600 = vmatpush3.bf16.msra.mxu1 %v3859_v53  ;;  %v3864_v48 = vld [vmem:[%s4947_s18 + $0x38] ss:$12 sps:$4 sm:$0xff]  }
 0x1ae   : > { %v1214_v16 = vrot.slane %v1213_v1, 2  ;;  %v1241_v17 = vadd.f32 %v1240_v2, %v1239_v56  ;;  %v1254_v18 = vrot.slane %v1253_v6, 4  ;;  %v1267_v22 = vsel %vm1175_vm14, %v1165_v41, 0.0  ;;  %3601 = vmatprep.subr.bf16.mxu1 %v3860_v59 }
 0x1af   : > { %3446 = vmatmul.mubr.msk.bf16.vlgmr.msra.gmra.mrb[0].mxu0 %vm1720_vm15, %v5139_v10  ;;  %v1188_v24 = vrot.slane %v1187_v13, 1  ;;  %v1201_v25 = vadd.f32 %v1200_v14, %v1199_v61  ;;  %v1228_v27 = vrot.slane %v1227_v15, 2  ;;  %v1268_v28 = vrot.slane %v1267_v22, 4 }
 0x1b0   : > { %3655 = vmatpush3.bf16.msra.mxu0 %v3858_v0  ;;  %v1215_v31 = vadd.f32 %v1214_v16, %v1213_v1  ;;  %v1242_v32 = vrot.slane %v1241_v17, 2  ;;  %v1255_v33 = vadd.f32 %v1254_v18, %v1253_v6  ;;  %v1281_v34 = vsel %vm1175_vm14, %v1166_v45, 0.0  ;;  %3662 = vmatprep.mubr.msk.bf16.mxu0 %vm4428_vm0, %v4426_v7 }
 0x1b1   : > { %3656 = vmatprep.subr.bf16.mxu0 %v4426_v7  ;;  %v1189_v35 = vadd.f32 %v1188_v24, %v1187_v13  ;;  %v1202_v36 = vrot.slane %v1201_v25, 1  ;;  %v1229_v37 = vadd.f32 %v1228_v27, %v1227_v15  ;;  %v1269_v38 = vadd.f32 %v1268_v28, %v1267_v22  ;;  %3602 = vmatpush3.bf16.msra.mxu1 %v3862_v12  ;;  %v3874_v15 = vld [vmem:[%s4947_s18 + $0x50] ss:$12 sps:$4 sm:$0xff]  }
 0x1b2   : > { %v1216_v40 = vrot.slane %v1215_v31, 1  ;;  %v1243_v41 = vadd.f32 %v1242_v32, %v1241_v17  ;;  %v1256_v42 = vrot.slane %v1255_v33, 2  ;;  %v1282_v43 = vrot.slane %v1281_v34, 4  ;;  %3603 = vmatprep.subr.bf16.mxu1 %v3863_v23  ;;  %v3877_v23 = vld [vmem:[%s4954_s14 + $0x4] ss:$12 sps:$4 sm:$0xff]  }
 0x1b3   : > { %v1203_v44 = vadd.f32 %v1202_v36, %v1201_v25  ;;  %v1230_v46 = vrot.slane %v1229_v37, 1  ;;  %v1270_v45 = vrot.slane %v1269_v38, 2  ;;  %v1289_v47 = vmul.f32 0.25, %v1189_v35 }
 0x1b4   : > { %3657 = vmatpush3.bf16.msra.mxu0 %v3861_v29  ;;  %v1217_v49 = vadd.f32 %v1216_v40, %v1215_v31  ;;  %v1244_v51 = vrot.slane %v1243_v41, 1  ;;  %v1257_v52 = vadd.f32 %v1256_v42, %v1255_v33  ;;  %v1283_v53 = vadd.f32 %v1282_v43, %v1281_v34  ;;  %v3880_v42 = vld [vmem:[%s4954_s14 + $0x1c] ss:$12 sps:$4 sm:$0xff]  }
 0x1b5   : > { %3658 = vmatprep.subr.bf16.mxu0 %v4426_v7  ;;  %v1231_v54 = vadd.f32 %v1230_v46, %v1229_v37  ;;  %v1271_v55 = vadd.f32 %v1270_v45, %v1269_v38  ;;  %v1291_v56 = vmul.f32 0.25, %v1203_v44  ;;  %v1305_v58 = vpack.c.bf16 %v1289_v47, %v1289_v47  ;;  %3604 = vmatpush3.bf16.msra.mxu1 %v3865_v39  ;;  %v3875_v38 = vld [vmem:[%s4954_s14] ss:$12 sps:$4 sm:$0xff]  }
 0x1b6   : > { %v1245_v59 = vadd.f32 %v1244_v51, %v1243_v41  ;;  %v1258_v60 = vrot.slane %v1257_v52, 1  ;;  %v1284_v61 = vrot.slane %v1283_v53, 2  ;;  %v1293_v62 = vmul.f32 0.25, %v1217_v49 }
 0x1b7   : > { %v1272_v63 = vrot.slane %v1271_v55, 1  ;;  %v1295_v0 = vmul.f32 0.25, %v1231_v54  ;;  %v1307_v1 = vpack.c.bf16 %v1291_v56, %v1291_v56  ;;  %v1889_v2 = vunpack.c.l.b16 %v1305_v58 }
 0x1b8   : > { %3659 = vmatpush3.bf16.msra.mxu0 %v3864_v48  ;;  %v1259_v6 = vadd.f32 %v1258_v60, %v1257_v52  ;;  %v1285_v12 = vadd.f32 %v1284_v61, %v1283_v53  ;;  %v1297_v13 = vmul.f32 0.25, %v1245_v59  ;;  %v1309_v14 = vpack.c.bf16 %v1293_v62, %v1293_v62 }
 0x1b9   : > { %v1273_v16 = vadd.f32 %v1272_v63, %v1271_v55  ;;  %v1311_v17 = vpack.c.bf16 %v1295_v0, %v1295_v0  ;;  %v1891_v18 = vunpack.c.l.b16 %v1307_v1  ;;  %3660 = vmatprep.subr.bf16.mxu0 %v4426_v7  ;;  %v1176_v22 = vsel %vm1175_vm14, %v5083_v50, 0.0  ;;  %v3878_v55 = vld [vmem:[%s4954_s14 + $0x18] ss:$12 sps:$4 sm:$0xff]  }
 0x1ba   : > { %v1286_v24 = vrot.slane %v1285_v12, 1  ;;  %v1299_v25 = vmul.f32 0.25, %v1259_v6  ;;  %v1313_v27 = vpack.c.bf16 %v1297_v13, %v1297_v13  ;;  %v1893_v28 = vunpack.c.l.b16 %v1309_v14 }
 0x1bb   : > { %v1301_v29 = vmul.f32 0.25, %v1273_v16  ;;  %v1895_v31 = vunpack.c.l.b16 %v1311_v17  ;;  %v1911_v32 = vsel %vm1338_vm4, %v1891_v18, %v1889_v2  ;;  %v1177_v33 = vrot.slane %v1176_v22, 4  ;;  %v3887_v16 = vld [vmem:[%s4954_s14 + $0x4c] ss:$12 sps:$4 sm:$0xff]  }
 0x1bc   : > { %v1287_v34 = vadd.f32 %v1286_v24, %v1285_v12  ;;  %v1315_v35 = vpack.c.bf16 %v1299_v25, %v1299_v25  ;;  %v1897_v36 = vunpack.c.l.b16 %v1313_v27  ;;  %v1912_v37 = vsel %vm1340_vm5, %v1893_v28, %v1911_v32  ;;  %3661 = vmatpush3.bf16.msra.mxu0 %v3874_v15  ;;  %v3881_v15 = vld [vmem:[%s4954_s14 + $0x30] ss:$12 sps:$4 sm:$0xff]   ;;  %v3885_v32 = vld [vmem:[%s4954_s14 + $0x48] ss:$12 sps:$4 sm:$0xff]  }
 0x1bd   : > { %v1317_v39 = vpack.c.bf16 %v1301_v29, %v1301_v29  ;;  %v1913_v50 = vsel %vm1342_vm6, %v1895_v31, %v1912_v37  ;;  %v1178_v40 = vadd.f32 %v1177_v33, %v1176_v22  ;;  %v1190_v41 = vsel %vm1175_vm14, %v5087_v57, 0.0  ;;  %2178 = vmatprep.subr.bf16.mxu0 %v3877_v23  ;;  %v3890_v37 = vld [vmem:[%s4954_s14 + $0x64] ss:$12 sps:$4 sm:$0xff]  }
 0x1be   : > { %v1303_v43 = vmul.f32 0.25, %v1287_v34  ;;  %v1899_v44 = vunpack.c.l.b16 %v1315_v35  ;;  %v1914_v46 = vsel %vm1344_vm7, %v1897_v36, %v1913_v50  ;;  %v1191_v45 = vrot.slane %v1190_v41, 4 }
 0x1bf   : > { %v1901_v47 = vunpack.c.l.b16 %v1317_v39  ;;  %v1179_v48 = vrot.slane %v1178_v40, 2  ;;  %v1204_v49 = vsel %vm1175_vm14, %v5091_v3, 0.0  ;;  %v1218_v51 = vsel %vm1175_vm14, %v5093_v4, 0.0  ;;  %3663 = vmatmul.mubr.msk.bf16.vlgmr.msra.gmra.mrb[4].mxu0 %vm1720_vm15, %v5139_v10  ;;  %v3883_v4 = vld [vmem:[%s4954_s14 + $0x34] ss:$12 sps:$4 sm:$0xff]  }
 0x1c0   : > { %v1319_v57 = vpack.c.bf16 %v1303_v43, %v1303_v43  ;;  %v1915_v52 = vsel %vm1346_vm8, %v1899_v44, %v1914_v46  ;;  %v1192_v53 = vadd.f32 %v1191_v45, %v1190_v41  ;;  %v1205_v54 = vrot.slane %v1204_v49, 4  ;;  %2179 = vmatpush1.bf16.msra.mxu0 %v3875_v38  ;;  %v5195_v44 = vld [vmem:[%s4956_s15] sm:$0x3f]  ;;  %s5516_s15 = sld [smem:[#allocation42_spill]] }
 0x1c1   : > { %v1916_v56 = vsel %vm1348_vm9, %v1901_v47, %v1915_v52  ;;  %v1180_v58 = vadd.f32 %v1179_v48, %v1178_v40  ;;  %v1219_v59 = vrot.slane %v1218_v51, 4  ;;  %v1232_v3 = vsel %vm1175_vm14, %v5100_v19, 0.0  ;;  %2180 = vmatprep.subr.bf16.mxu0 %v3880_v42 }
 0x1c2   : > { %v1903_v60 = vunpack.c.l.b16 %v1319_v57  ;;  %v1193_v61 = vrot.slane %v1192_v53, 2  ;;  %v1206_v62 = vadd.f32 %v1205_v54, %v1204_v49  ;;  %v1233_v63 = vrot.slane %v1232_v3, 4  ;;  %v3888_v49 = vld [vmem:[%s4954_s14 + $0x60] ss:$12 sps:$4 sm:$0xff]   ;;  %v3896_v54 = vld [vmem:[%s4954_s14 + $0x7c] ss:$12 sps:$4 sm:$0xff]  }
 0x1c3   : > { %v1181_v0 = vrot.slane %v1180_v58, 1  ;;  %v1220_v1 = vadd.f32 %v1219_v59, %v1218_v51  ;;  %v1246_v2 = vsel %vm1175_vm14, %v5102_v20, 0.0  ;;  %v1260_v6 = vsel %vm1175_vm14, %v5105_v26, 0.0 }
 0x1c4   : > { %v1917_v12 = vsel %vm1350_vm10, %v1903_v60, %v1916_v56  ;;  %v1194_v13 = vadd.f32 %v1193_v61, %v1192_v53  ;;  %v1207_v19 = vrot.slane %v1206_v62, 2  ;;  %v1234_v14 = vadd.f32 %v1233_v63, %v1232_v3  ;;  %2181 = vmatpush1.bf16.msra.mxu0 %v3878_v55 }
 0x1c5   : > { %v5186_v17 = vpack.c.b16 %v1917_v12, %v1917_v12  ;;  %v1182_v18 = vadd.f32 %v1181_v0, %v1180_v58  ;;  %v1221_v22 = vrot.slane %v1220_v1, 2  ;;  %v1247_v23 = vrot.slane %v1246_v2, 4  ;;  %2182 = vmatprep.subr.bf16.mxu0 %v3883_v4 }
 0x1c6   : > { %v1195_v24 = vrot.slane %v1194_v13, 1  ;;  %v1208_v20 = vadd.f32 %v1207_v19, %v1206_v62  ;;  %v1235_v25 = vrot.slane %v1234_v14, 2  ;;  %v1261_v26 = vrot.slane %v1260_v6, 4 }
 0x1c7   : > { %2251 = vmatprep.mubr.bf16.mxu1 %v5186_v17  ;;  %v1222_v27 = vadd.f32 %v1221_v22, %v1220_v1  ;;  %v1248_v28 = vadd.f32 %v1247_v23, %v1246_v2  ;;  %v1274_v29 = vsel %vm1175_vm14, %v5109_v30, 0.0  ;;  %v1288_v31 = vmul.f32 0.25, %v1182_v18  ;;  %2210 = vmatprep.mubr.bf16.mxu0 %v5186_v17  ;;  %v3894_v2 = vld [vmem:[%s4954_s14 + $0x78] ss:$12 sps:$4 sm:$0xff]  }
 0x1c8   : > { %v1196_v33 = vadd.f32 %v1195_v24, %v1194_v13  ;;  %v1209_v34 = vrot.slane %v1208_v20, 1  ;;  %v1236_v35 = vadd.f32 %v1235_v25, %v1234_v14  ;;  %v1262_v36 = vadd.f32 %v1261_v26, %v1260_v6  ;;  %2183 = vmatpush1.bf16.msra.mxu0 %v3881_v15  ;;  %v3899_v14 = vld [vmem:[%s4954_s14 + $0x94] ss:$12 sps:$4 sm:$0xff]  }
 0x1c9   : > { %v1223_v38 = vrot.slane %v1222_v27, 1  ;;  %v1249_v39 = vrot.slane %v1248_v28, 2  ;;  %v1275_v50 = vrot.slane %v1274_v29, 4  ;;  %v1304_v40 = vpack.c.bf16 %v1288_v31, %v1288_v31  ;;  %2184 = vmatprep.subr.bf16.mxu0 %v3887_v16 }
 0x1ca   : > { %v1210_v41 = vadd.f32 %v1209_v34, %v1208_v20  ;;  %v1237_v30 = vrot.slane %v1236_v35, 1  ;;  %v1263_v42 = vrot.slane %v1262_v36, 2  ;;  %v1290_v43 = vmul.f32 0.25, %v1196_v33  ;;  %v3906_v33 = vld [vmem:[%s4954_s14 + $0xac] ss:$12 sps:$4 sm:$0xff]  }
 0x1cb   : > { %v1224_v46 = vadd.f32 %v1223_v38, %v1222_v27  ;;  %v1250_v45 = vadd.f32 %v1249_v39, %v1248_v28  ;;  %v1276_v47 = vadd.f32 %v1275_v50, %v1274_v29  ;;  %v1888_v48 = vunpack.c.l.b16 %v1304_v40  ;;  %v3897_v29 = vld [vmem:[%s4954_s14 + $0x90] ss:$12 sps:$4 sm:$0xff]   ;;  %v3904_v38 = vld [vmem:[%s4954_s14 + $0xa8] ss:$12 sps:$4 sm:$0xff]  }
 0x1cc   : > { %v1238_v51 = vadd.f32 %v1237_v30, %v1236_v35  ;;  %v1264_v57 = vadd.f32 %v1263_v42, %v1262_v36  ;;  %v1292_v52 = vmul.f32 0.25, %v1210_v41  ;;  %v1306_v53 = vpack.c.bf16 %v1290_v43, %v1290_v43  ;;  %2185 = vmatpush1.bf16.msra.mxu0 %v3885_v32  ;;  %v3912_v50 = vld [vmem:[%s4954_s14 + $0xc4] ss:$12 sps:$4 sm:$0xff]   ;;  %v3910_v43 = vld [vmem:[%s4954_s14 + $0xc0] ss:$12 sps:$4 sm:$0xff]  }
 0x1cd   : > { %v1251_v55 = vrot.slane %v1250_v45, 1  ;;  %v1277_v56 = vrot.slane %v1276_v47, 2  ;;  %v1294_v58 = vmul.f32 0.25, %v1224_v46  ;;  %v2275_v59 = vrot.slane %v5195_v44, %v4981_v11  ;;  %2186 = vmatprep.subr.bf16.mxu0 %v3890_v37  ;;  %v3918_v46 = vld [vmem:[%s4954_s14 + $0xdc] ss:$12 sps:$4 sm:$0xff]  }
 0x1ce   : > { %v1265_v3 = vrot.slane %v1264_v57, 1  ;;  %v1296_v4 = vmul.f32 0.25, %v1238_v51  ;;  %v1308_v60 = vpack.c.bf16 %v1292_v52, %v1292_v52  ;;  %v1890_v61 = vunpack.c.l.b16 %v1306_v53  ;;  %v3922_v51 = vld [vmem:[%s4954_s14 + $0xf0] ss:$12 sps:$4 sm:$0xff]  }
 0x1cf   : > { %v1252_v62 = vadd.f32 %v1251_v55, %v1250_v45  ;;  %v1278_v63 = vadd.f32 %v1277_v56, %v1276_v47  ;;  %v1310_v0 = vpack.c.bf16 %v1294_v58, %v1294_v58  ;;  %v2283_v1 = vcombine.high %v2275_v59, %v2275_v59  ;;  %v3916_v47 = vld [vmem:[%s4954_s14 + $0xd8] ss:$12 sps:$4 sm:$0xff]   ;;  %v3942_v55 = vld [vmem:[%s4954_s14 + $0x13c] ss:$12 sps:$4 sm:$0xff]   ;;  %v3948_v58 = vld [vmem:[%s4954_s14 + $0x154] ss:$12 sps:$4 sm:$0xff]  }
 0x1d0   : > { %v1266_v6 = vadd.f32 %v1265_v3, %v1264_v57  ;;  %v1312_v12 = vpack.c.bf16 %v1296_v4, %v1296_v4  ;;  %v1892_v13 = vunpack.c.l.b16 %v1308_v60  ;;  %v1904_v19 = vsel %vm1338_vm4, %v1890_v61, %v1888_v48  ;;  %2187 = vmatpush1.bf16.msra.mxu0 %v3888_v49  ;;  %v3893_v49 = vld [vmem:[%s4963_s19 + $0x4] ss:$12 sps:$4 sm:$0xff]   ;;  %v3930_v57 = vld [vmem:[%s4954_s14 + $0x10c] ss:$12 sps:$4 sm:$0xff]  }
 0x1d1   : > { %v1279_v15 = vrot.slane %v1278_v63, 1  ;;  %v1298_v16 = vmul.f32 0.25, %v1252_v62  ;;  %v1894_v18 = vunpack.c.l.b16 %v1310_v0  ;;  %3496 = vmatprep.subr.msk.bf16.mxu1 %vm1374_vm1, %v2283_v1  ;;  %2188 = vmatprep.subr.bf16.mxu0 %v3896_v54  ;;  %v2285_v30 = vsel %vm1374_vm1, %v2275_v59, 0  ;;  %v3936_v52 = vld [vmem:[%s4954_s14 + $0x124] ss:$12 sps:$4 sm:$0xff]  }
 0x1d2   : > { %v1300_v22 = vmul.f32 0.25, %v1266_v6  ;;  %v1896_v23 = vunpack.c.l.b16 %v1312_v12  ;;  %v1905_v24 = vsel %vm1340_vm5, %v1892_v13, %v1904_v19  ;;  %v2268_v42 = vcombine.high %v5195_v44, %v5195_v44  ;;  %v3924_v44 = vld [vmem:[%s4954_s14 + $0xf4] ss:$12 sps:$4 sm:$0xff]   ;;  %v3891_v53 = vld [vmem:[%s4963_s19] ss:$12 sps:$4 sm:$0xff]  }
 0x1d3   : > { %v1280_v20 = vadd.f32 %v1279_v15, %v1278_v63  ;;  %v1314_v25 = vpack.c.bf16 %v1298_v16, %v1298_v16  ;;  %v1906_v26 = vsel %vm1342_vm6, %v1894_v18, %v1905_v24  ;;  %v3934_v54 = vld [vmem:[%s4954_s14 + $0x120] ss:$12 sps:$4 sm:$0xff]   ;;  %v3940_v56 = vld [vmem:[%s4954_s14 + $0x138] ss:$12 sps:$4 sm:$0xff]   ;;  %v3946_v4 = vld [vmem:[%s4954_s14 + $0x150] ss:$12 sps:$4 sm:$0xff]  }
 0x1d4   : > { %v1316_v27 = vpack.c.bf16 %v1300_v22, %v1300_v22  ;;  %v1907_v28 = vsel %vm1344_vm7, %v1896_v23, %v1906_v26  ;;  %2189 = vmatpush1.bf16.msra.mxu0 %v3894_v2  ;;  %v2282_v45 = vrot.slane %v2268_v42, %v4981_v11  ;;  %v3928_v11 = vld [vmem:[%s4954_s14 + $0x108] ss:$12 sps:$4 sm:$0xff]   ;;  %v3903_v3 = vld [vmem:[%s4965_s1 + $0x4] ss:$12 sps:$4 sm:$0xff]   ;;  %v3909_v62 = vld [vmem:[%s4965_s1 + $0x1c] ss:$12 sps:$4 sm:$0xff]  }
 0x1d5   : > { %v1302_v31 = vmul.f32 0.25, %v1280_v20  ;;  %v1898_v32 = vunpack.c.l.b16 %v1314_v25  ;;  %2190 = vmatprep.subr.bf16.mxu0 %v3899_v14  ;;  %v3900_v59 = vld [vmem:[%s4963_s19 + $0x8] ss:$12 sps:$4 sm:$0xff]   ;;  %v3901_v61 = vld [vmem:[%s4965_s1] ss:$12 sps:$4 sm:$0xff]   ;;  %s889_s19 = scalar_lea.vmem %s5516_s15, %s5532_s25  ;;  %s3069_s25 = scalar_lea.sflag [#allocation4], %s4931_s24 }
 0x1d6   : > { %v1900_v34 = vunpack.c.l.b16 %v1316_v27  ;;  %v2291_v48 = vsel %vm1374_vm1, %v2282_v45, 0  ;;  %v3952_v60 = vld [vmem:[%s4954_s14 + $0x168] ss:$12 sps:$4 sm:$0xff]   ;;  %v3958_v63 = vld [vmem:[%s4965_s1 + $0x8] ss:$12 sps:$4 sm:$0xff]  }
 0x1d7   : > { %v1318_v35 = vpack.c.bf16 %v1302_v31, %v1302_v31  ;;  %v1908_v36 = vsel %vm1346_vm8, %v1898_v32, %v1907_v28  ;;  %v3907_v0 = vld [vmem:[%s4965_s1 + $0x18] ss:$12 sps:$4 sm:$0xff]   ;;  %v3915_v1 = vld [vmem:[%s4965_s1 + $0x34] ss:$12 sps:$4 sm:$0xff]   ;;  %v3970_v19 = vld [vmem:[%s4965_s1 + $0x50] ss:$12 sps:$4 sm:$0xff]  }
 0x1d8   : > { %v1909_v37 = vsel %vm1348_vm9, %v1900_v34, %v1908_v36  ;;  %2191 = vmatpush1.bf16.msra.mxu0 %v3897_v29  ;;  %v3962_v2 = vld [vmem:[%s4965_s1 + $0x20] ss:$12 sps:$4 sm:$0xff]   ;;  %v3966_v6 = vld [vmem:[%s4965_s1 + $0x38] ss:$12 sps:$4 sm:$0xff]   ;;  %v3919_v12 = vld [vmem:[%s4965_s1 + $0x48] ss:$12 sps:$4 sm:$0xff]  }
 0x1d9   : > { %v1902_v39 = vunpack.c.l.b16 %v1318_v35  ;;  %2192 = vmatprep.subr.bf16.mxu0 %v3906_v33  ;;  %v3927_v13 = vld [vmem:[%s4968_s16 + $0x4] ss:$12 sps:$4 sm:$0xff]   ;;  %v3974_v14 = vld [vmem:[%s4968_s16 + $0xc8] ss:$12 sps:$4 sm:$0xff]   ;;  %v3925_v15 = vld [vmem:[%s4968_s16] ss:$12 sps:$4 sm:$0xff]  }
 0x1da   : > { %v3933_v16 = vld [vmem:[%s4968_s16 + $0x1c] ss:$12 sps:$4 sm:$0xff]   ;;  %v3979_v22 = vld [vmem:[%s4968_s16 + $0xe0] ss:$12 sps:$4 sm:$0xff]   ;;  %v3931_v23 = vld [vmem:[%s4968_s16 + $0x18] ss:$12 sps:$4 sm:$0xff]  }
 0x1db   : > { %v1910_v40 = vsel %vm1350_vm10, %v1902_v39, %v1909_v37  ;;  %v3975_v18 = vld [vmem:[%s4968_s16 + $0x8] ss:$12 sps:$4 sm:$0xff]   ;;  %v3980_v24 = vld [vmem:[%s4968_s16 + $0x20] ss:$12 sps:$4 sm:$0xff]   ;;  %v3984_v20 = vld [vmem:[%s4968_s16 + $0xf8] ss:$12 sps:$4 sm:$0xff]  }
 0x1dc   : > { %v5215_v41 = vpack.c.b16 %v1910_v40, %v1910_v40  ;;  %2193 = vmatpush1.bf16.msra.mxu0 %v3904_v38  ;;  %v3937_v25 = vld [vmem:[%s4968_s16 + $0x30] ss:$12 sps:$4 sm:$0xff]   ;;  %v3945_v26 = vld [vmem:[%s4968_s16 + $0x4c] ss:$12 sps:$4 sm:$0xff]   ;;  %v3943_v28 = vld [vmem:[%s4968_s16 + $0x48] ss:$12 sps:$4 sm:$0xff]  }
 0x1dd   : > { %2194 = vmatprep.subr.bf16.mxu0 %v3912_v50  ;;  %v3985_v27 = vld [vmem:[%s4968_s16 + $0x38] ss:$12 sps:$4 sm:$0xff]   ;;  %v3990_v29 = vld [vmem:[%s4968_s16 + $0x50] ss:$12 sps:$4 sm:$0xff]   ;;  %v3994_v31 = vld [vmem:[%s4968_s16 + $0x128] ss:$12 sps:$4 sm:$0xff]  }
 0x1de   : > { %2252 = vmatmul.mubr.bf16.vlgmr.msra.gmra.mrb[8].mxu1 %v5215_v41  ;;  %v3949_v32 = vld [vmem:[%s4968_s16 + $0x60] ss:$12 sps:$4 sm:$0xff]   ;;  %v3957_v33 = vld [vmem:[%s4968_s16 + $0x7c] ss:$12 sps:$4 sm:$0xff]   ;;  %v3955_v36 = vld [vmem:[%s4968_s16 + $0x78] ss:$12 sps:$4 sm:$0xff]  }
 0x1df   : > { %2294 = vmatpush1.bf16.msra.mxu1 %v2285_v30  ;;  %2325 = vmatprep.mubr.bf16.mxu1 %v4427_v9  ;;  %v3995_v34 = vld [vmem:[%s4968_s16 + $0x68] ss:$12 sps:$4 sm:$0xff]   ;;  %v3999_v35 = vld [vmem:[%s4968_s16 + $0x140] ss:$12 sps:$4 sm:$0xff]   ;;  %v4004_v39 = vld [vmem:[%s4968_s16 + $0x158] ss:$12 sps:$4 sm:$0xff]  }
 0x1e0   : > { %3666 = vmatprep.subr.bf16.mxu1 %v4426_v7  ;;  %2195 = vmatpush1.bf16.msra.mxu0 %v3910_v43  ;;  %v3961_v37 = vld [vmem:[%s4968_s16 + $0x94] ss:$12 sps:$4 sm:$0xff]   ;;  %v3959_v50 = vld [vmem:[%s4968_s16 + $0x90] ss:$12 sps:$4 sm:$0xff]   ;;  %v3965_v40 = vld [vmem:[%s4968_s16 + $0xac] ss:$12 sps:$4 sm:$0xff]  }
 0x1e1   : > { %2196 = vmatprep.subr.bf16.mxu0 %v3918_v46  ;;  %v4000_v38 = vld [vmem:[%s4968_s16 + $0x80] ss:$12 sps:$4 sm:$0xff]   ;;  %v4005_v30 = vld [vmem:[%s4968_s16 + $0x98] ss:$12 sps:$4 sm:$0xff]   ;;  %v4006_v42 = vld [vmem:[%s4968_s16 + $0x170] ss:$12 sps:$4 sm:$0xff]  }
 0x1e2   : > { %v3963_v43 = vld [vmem:[%s4968_s16 + $0xa8] ss:$12 sps:$4 sm:$0xff]   ;;  %v3969_v46 = vld [vmem:[%s4968_s16 + $0xc4] ss:$12 sps:$4 sm:$0xff]  }
 0x1e3   : > { %v4007_v45 = vld [vmem:[%s4968_s16 + $0xb0] ss:$12 sps:$4 sm:$0xff]  }
 0x1e4   : > { %2197 = vmatpush1.bf16.msra.mxu0 %v3916_v47  ;;  %v3967_v47 = vld [vmem:[%s4968_s16 + $0xc0] ss:$12 sps:$4 sm:$0xff]  }
 0x1e5   : > { %2198 = vmatprep.subr.bf16.mxu0 %v3924_v44  ;;  %v3973_v44 = vld [vmem:[%s4968_s16 + $0xdc] ss:$12 sps:$4 sm:$0xff]  }
 0x1e6   : > { %3497 = vmatmul.mubr.msk.bf16.vlgmr.msra.gmra.mrb[12].mxu1 %vm1370_vm11, %v5038_v21 }
 0x1e7   : > { %3667 = vmatpush3.bf16.msra.mxu1 %v2291_v48  ;;  %3668 = vmatprep.mubr.msk.bf16.mxu1 %vm4428_vm0, %v4426_v7  ;;  %v3971_v48 = vld [vmem:[%s4968_s16 + $0xd8] ss:$12 sps:$4 sm:$0xff]  }
 0x1e8   : > { %2413 = vmatprep.subr.bf16.mxu1 %v3893_v49  ;;  %2199 = vmatpush1.bf16.msra.mxu0 %v3922_v51  ;;  %v3978_v49 = vld [vmem:[%s4968_s16 + $0xf4] ss:$12 sps:$4 sm:$0xff]   ;;  %v3976_v51 = vld [vmem:[%s4968_s16 + $0xf0] ss:$12 sps:$4 sm:$0xff]  }
 0x1e9   : > { %2200 = vmatprep.subr.bf16.mxu0 %v3930_v57  ;;  %v3983_v57 = vld [vmem:[%s4968_s16 + $0x10c] ss:$12 sps:$4 sm:$0xff]  }
 0x1ec   : > { %2201 = vmatpush1.bf16.msra.mxu0 %v3928_v11  ;;  %v3981_v11 = vld [vmem:[%s4968_s16 + $0x108] ss:$12 sps:$4 sm:$0xff]  }
 0x1ed   : > { %2202 = vmatprep.subr.bf16.mxu0 %v3936_v52  ;;  %v3988_v52 = vld [vmem:[%s4968_s16 + $0x124] ss:$12 sps:$4 sm:$0xff]  }
 0x1ee   : > { %3669 = vmatmul.mubr.msk.bf16.vlgmr.msra.gmra.mrb[16].mxu1 %vm1370_vm11, %v5038_v21  ;;  %v3954_v21 = vld [vmem:[%s4954_s14 + $0x16c] ss:$12 sps:$4 sm:$0xff]   ;;  %s4429_s14 = smov [#allocation20]  }
 0x1ef   : > { %2414 = vmatpush1.bf16.msra.mxu1 %v3891_v53  ;;  %2445 = vmatprep.mubr.bf16.mxu1 %v4427_v9  ;;  %v3986_v53 = vld [vmem:[%s4968_s16 + $0x120] ss:$12 sps:$4 sm:$0xff]   ;;  %s4292_s15 = sshll.u32 %s4429_s14, 4  ;;  %s4293_s15 = int_to_ptr.vmem [resolvable:$false] %s4292_s15 }
 0x1f0   : > { %3672 = vmatprep.subr.bf16.mxu1 %v4426_v7  ;;  %2203 = vmatpush1.bf16.msra.mxu0 %v3934_v54  ;;  %v3993_v54 = vld [vmem:[%s4968_s16 + $0x13c] ss:$12 sps:$4 sm:$0xff]  }
 0x1f1   : > { %2204 = vmatprep.subr.bf16.mxu0 %v3942_v55  ;;  %v3991_v55 = vld [vmem:[%s4968_s16 + $0x138] ss:$12 sps:$4 sm:$0xff]  }
 0x1f4   : > { %2205 = vmatpush1.bf16.msra.mxu0 %v3940_v56  ;;  %v3998_v56 = vld [vmem:[%s4968_s16 + $0x154] ss:$12 sps:$4 sm:$0xff]  }
 0x1f5   : > { %2206 = vmatprep.subr.bf16.mxu0 %v3948_v58  ;;  %v3996_v58 = vld [vmem:[%s4968_s16 + $0x150] ss:$12 sps:$4 sm:$0xff]  }
 0x1f6   : > { %3502 = vmatmul.mubr.msk.bf16.vlgmr.msra.gmra.mrb[12].mxu1 %vm1528_vm13, %v5066_v5 }
 0x1f7   : > { %3673 = vmatpush3.bf16.msra.mxu1 %v3900_v59  ;;  %3674 = vmatprep.mubr.msk.bf16.mxu1 %vm4428_vm0, %v4426_v7  ;;  %v4003_v59 = vld [vmem:[%s4968_s16 + $0x16c] ss:$12 sps:$4 sm:$0xff]  }
 0x1f8   : > { %2577 = vmatprep.subr.bf16.mxu1 %v3903_v3  ;;  %2207 = vmatpush1.bf16.msra.mxu0 %v3946_v4  ;;  %v4001_v3 = vld [vmem:[%s4968_s16 + $0x168] ss:$12 sps:$4 sm:$0xff]  }
 0x1f9   : > { %2208 = vmatprep.subr.bf16.mxu0 %v3954_v21 }
 0x1fc   : > { %2209 = vmatpush1.bf16.msra.mxu0 %v3952_v60 }
 0x1fd   : > { %3678 = vmatprep.subr.bf16.mxu0 %v4426_v7 }
 0x1fe   : > { %3675 = vmatmul.mubr.msk.bf16.vlgmr.msra.gmra.mrb[20].mxu1 %vm1528_vm13, %v5066_v5  ;;  %v3913_v5 = vld [vmem:[%s4965_s1 + $0x30] ss:$12 sps:$4 sm:$0xff]  }
 0x1ff   : > { %2578 = vmatpush1.bf16.msra.mxu1 %v3901_v61  ;;  %2609 = vmatprep.mubr.bf16.mxu1 %v4427_v9  ;;  %v3921_v9 = vld [vmem:[%s4965_s1 + $0x4c] ss:$12 sps:$4 sm:$0xff]   ;;  %s870_s1 = scalar_lea.vmem [#allocation20], %s4941_s0 }
 0x200   : > { %2579 = vmatprep.subr.bf16.mxu1 %v3909_v62  ;;  %2211 = vmatmul.mubr.bf16.vlgmr.msra.gmra.mrb[0].mxu0 %v5215_v41  ;;  %v1476_v62 = vsub.s32 2, %v4975_v8  ;;  %s3088_s28 = sshll.u32 %s870_s1, 4  ;;  %s5359_s28 = int_to_ptr.vmem [resolvable:$true] %s3088_s28 }
 0x201   : > { %3679 = vmatpush3.bf16.msra.mxu0 %v3958_v63  ;;  %3686 = vmatprep.mubr.msk.bf16.mxu0 %vm4428_vm0, %v4426_v7  ;;  %v1320_v63 = vld [vmem:[%s889_s19] sm:$0x7]  ;;  %s4288_s18 = scalar_lea.vmem %s5359_s28, 384  ;;  %s4294_s19 = scalar_lea.vmem %s4293_s15, 768 }
 0x202   : > { %3680 = vmatprep.subr.bf16.mxu0 %v4426_v7  ;;  %p4289_p5 = scmp.ne.s32.totalorder %s5359_s28, %s4288_s18  ;;  %p4295_p12 = scmp.lt.s32.totalorder %s5359_s28, %s4293_s15 }
 0x203   : > { %2580 = vmatpush1.bf16.msra.mxu1 %v3907_v0  ;;  %v1477_v0 = vrot.slane %v1320_v63, %v1476_v62  ;;  %p4296_p13 = scmp.lt.s32.totalorder %s4294_s19, %s4288_s18 }
 0x204   : > { %2581 = vmatprep.subr.bf16.mxu1 %v3915_v1  ;;  %p4290_p11 = pnand %p4289_p5, %p5520_p3 }
 0x205   : > { %3681 = vmatpush3.bf16.msra.mxu0 %v3962_v2  ;;  %p4297_p9 = por %p4296_p13, %p4295_p12 }
 0x206   : > { %3682 = vmatprep.subr.bf16.mxu0 %v4426_v7  ;;  %p4291_p0 = pneg %p4290_p11 }
 0x207   : > { %2582 = vmatpush1.bf16.msra.mxu1 %v3913_v5 }
 0x208   : > { %2583 = vmatprep.subr.bf16.mxu1 %v3921_v9  ;;  %p4298_p7 = pnand %p4297_p9, %p4291_p0 }
 0x209   : > { %3683 = vmatpush3.bf16.msra.mxu0 %v3966_v6 }
 0x20a   : > { %3684 = vmatprep.subr.bf16.mxu0 %v4426_v7  ;;  %v3939_v7 = vld [vmem:[%s4968_s16 + $0x34] ss:$12 sps:$4 sm:$0xff]  }
 0x20b   : > { %2584 = vmatpush1.bf16.msra.mxu1 %v3919_v12 }
 0x20c   : > { %2981 = vmatprep.subr.bf16.mxu1 %v3927_v13 }
 0x20d   : > { %3685 = vmatpush3.bf16.msra.mxu0 %v3970_v19 }
 0x20e   : > { %3516 = vmatmul.mubr.msk.bf16.vlgmr.msra.gmra.mrb[12].mxu1 %vm1720_vm15, %v5139_v10  ;;  %3620 = vmatprep.subr.bf16.mxu0 %v3974_v14 }
 0x20f   : > { %2982 = vmatpush1.bf16.msra.mxu1 %v3925_v15  ;;  %3013 = vmatprep.mubr.bf16.mxu1 %v5186_v17 }
 0x210   : > { %2983 = vmatprep.subr.bf16.mxu1 %v3933_v16  ;;  %3687 = vmatmul.mubr.msk.bf16.vlgmr.msra.gmra.mrb[8].mxu0 %vm1720_vm15, %v5139_v10  ;;  %v3989_v10 = vld [vmem:[%s4968_s16 + $0x110] ss:$12 sps:$4 sm:$0xff]  }
 0x211   : > { %3621 = vmatpush3.bf16.msra.mxu0 %v3975_v18  ;;  %3054 = vmatprep.mubr.bf16.mxu0 %v5186_v17  ;;  %v3951_v17 = vld [vmem:[%s4968_s16 + $0x64] ss:$12 sps:$4 sm:$0xff]  }
 0x212   : > { %3622 = vmatprep.subr.bf16.mxu0 %v3979_v22 }
 0x213   : > { %2984 = vmatpush1.bf16.msra.mxu1 %v3931_v23 }
 0x214   : > { %2985 = vmatprep.subr.bf16.mxu1 %v3939_v7 }
 0x215   : > { %3623 = vmatpush3.bf16.msra.mxu0 %v3980_v24 }
 0x216   : > { %3624 = vmatprep.subr.bf16.mxu0 %v3984_v20 }
 0x217   : > { %2986 = vmatpush1.bf16.msra.mxu1 %v3937_v25 }
 0x218   : > { %2987 = vmatprep.subr.bf16.mxu1 %v3945_v26 }
 0x219   : > { %3625 = vmatpush3.bf16.msra.mxu0 %v3985_v27 }
 0x21a   : > { %3626 = vmatprep.subr.bf16.mxu0 %v3989_v10  ;;  %v5346_v10 = vld [vmem:[%s894_s3] sm:$0x7] }
 0x21b   : > { %2988 = vmatpush1.bf16.msra.mxu1 %v3943_v28  ;;  %v2386_v28 = vrot.slane %v5346_v10, %v1476_v62 }
 0x21c   : > { %2989 = vmatprep.subr.bf16.mxu1 %v3951_v17  ;;  %v1468_v17 = vsub.s32 0, %v4975_v8 }
 0x21d   : > { %3627 = vmatpush3.bf16.msra.mxu0 %v3990_v29  ;;  %v1472_v29 = vsub.s32 1, %v4975_v8 }
 0x21e   : > { %3628 = vmatprep.subr.bf16.mxu0 %v3994_v31 }
 0x21f   : > { %2990 = vmatpush1.bf16.msra.mxu1 %v3949_v32  ;;  %v1469_v32 = vrot.slane %v1320_v63, %v1468_v17 }
 0x220   : > { %2991 = vmatprep.subr.bf16.mxu1 %v3957_v33 }
 0x221   : > { %3629 = vmatpush3.bf16.msra.mxu0 %v3995_v34  ;;  %v1473_v34 = vrot.slane %v1320_v63, %v1472_v29 }
 0x222   : > { %3630 = vmatprep.subr.bf16.mxu0 %v3999_v35 }
 0x223   : > { %2992 = vmatpush1.bf16.msra.mxu1 %v3955_v36 }
 0x224   : > { %2993 = vmatprep.subr.bf16.mxu1 %v3961_v37 }
 0x225   : > { %3631 = vmatpush3.bf16.msra.mxu0 %v4000_v38 }
 0x226   : > { %3632 = vmatprep.subr.bf16.mxu0 %v4004_v39 }
 0x227   : > { %2994 = vmatpush1.bf16.msra.mxu1 %v3959_v50 }
 0x228   : > { %2995 = vmatprep.subr.bf16.mxu1 %v3965_v40 }
 0x229   : > { %3633 = vmatpush3.bf16.msra.mxu0 %v4005_v30 }
 0x22a   : > { %3634 = vmatprep.subr.bf16.mxu0 %v4006_v42 }
 0x22b   : > { %2996 = vmatpush1.bf16.msra.mxu1 %v3963_v43 }
 0x22c   : > { %2997 = vmatprep.subr.bf16.mxu1 %v3969_v46 }
 0x22d   : > { %3635 = vmatpush3.bf16.msra.mxu0 %v4007_v45 }
 0x22f   : > { %2998 = vmatpush1.bf16.msra.mxu1 %v3967_v47 }
 0x230   : > { %2999 = vmatprep.subr.bf16.mxu1 %v3973_v44  ;;  %3055 = vmatmul.mubr.bf16.vlgmr.msra.gmra.mrb[12].mxu0 %v5215_v41 }
 0x233   : > { %3000 = vmatpush1.bf16.msra.mxu1 %v3971_v48 }
 0x234   : > { %3001 = vmatprep.subr.bf16.mxu1 %v3978_v49 }
 0x237   : > { %3002 = vmatpush1.bf16.msra.mxu1 %v3976_v51 }
 0x238   : > { %3003 = vmatprep.subr.bf16.mxu1 %v3983_v57 }
 0x23b   : > { %3004 = vmatpush1.bf16.msra.mxu1 %v3981_v11 }
 0x23c   : > { %3005 = vmatprep.subr.bf16.mxu1 %v3988_v52 }
 0x23f   : > { %3006 = vmatpush1.bf16.msra.mxu1 %v3986_v53 }
 0x240   : > { %3007 = vmatprep.subr.bf16.mxu1 %v3993_v54 }
 0x243   : > { %3008 = vmatpush1.bf16.msra.mxu1 %v3991_v55 }
 0x244   : > { %3009 = vmatprep.subr.bf16.mxu1 %v3998_v56 }
 0x247   : > { %3010 = vmatpush1.bf16.msra.mxu1 %v3996_v58 }
 0x248   : > { %3011 = vmatprep.subr.bf16.mxu1 %v4003_v59 }
 0x24b   : > { %3012 = vmatpush1.bf16.msra.mxu1 %v4001_v3 }
 0x24e   : > { %3014 = vmatmul.mubr.bf16.vlgmr.msra.gmra.mrb[12].mxu1 %v5215_v41 }
 0x254   : > { %v1459_v4 = vpop.f32.mrb[0].mxu1 }
 0x255   : > { %v3646_v21 = vpop.f32.mrb[1].mxu1  ;;  %v1483_v1 = vadd.f32 %v1477_v0, %v1459_v4 }
 0x256   : > { %v1462_v60 = vpop.f32.mrb[2].mxu1 }
 0x257   : > { %v3647_v61 = vpop.f32.mrb[3].mxu1 }
 0x26b   : > { %v1607_v2 = vpop.f32.mrb[4].mxu1 }
 0x26c   : > { %v1615_v41 = vadd.f32 %v1607_v2, %v1483_v1  ;;  %v3652_v5 = vpop.f32.mrb[5].mxu1 }
 0x26d   : > { %v1610_v9 = vpop.f32.mrb[6].mxu1 }
 0x26e   : > { %v3653_v6 = vpop.f32.mrb[7].mxu1 }
 0x292   : > { %v1799_v12 = vpop.f32.mrb[4].mxu0 }
 0x293   : > { %v1807_v13 = vadd.f32 %v1799_v12, %v1615_v41  ;;  %v3664_v19 = vpop.f32.mrb[5].mxu0 }
 0x294   : > { %v1802_v14 = vpop.f32.mrb[6].mxu0 }
 0x295   : > { %v3665_v15 = vpop.f32.mrb[7].mxu0 }
 0x2b1   : > { %v3605_v16 = vpop.f32.mrb[8].mxu1 }
 0x2b2   : > { %v3606_v18 = vpop.f32.mrb[9].mxu1 }
 0x2b3   : > { %v3607_v22 = vadd.f32 %v3606_v18, %v3605_v16  ;;  %v3608_v23 = vpop.f32.mrb[10].mxu1 }
 0x2b4   : > { %v3609_v7 = vpop.f32.mrb[11].mxu1 }
 0x2b5   : > { %v2261_v24 = vadd.f32 %v3607_v22, %v1807_v13 }
 0x2b7   : > { %2264 = vst [vmem:[%s870_s1 + $0x10] sm:$0xff] %v2261_v24 }
 0x2c1   : > { %v2368_v20 = vpop.f32.mrb[16].mxu1 }
 0x2c2   : > { %v3670_v25 = vpop.f32.mrb[17].mxu1  ;;  %v2392_v31 = vadd.f32 %v2386_v28, %v2368_v20 }
 0x2c3   : > { %v2371_v26 = vpop.f32.mrb[18].mxu1 }
 0x2c4   : > { %v3671_v27 = vpop.f32.mrb[19].mxu1 }
 0x2d1   : > { %v2488_v33 = vpop.f32.mrb[20].mxu1 }
 0x2d2   : > { %v2496_v35 = vadd.f32 %v2488_v33, %v2392_v31  ;;  %v3676_v36 = vpop.f32.mrb[21].mxu1 }
 0x2d3   : > { %v2491_v37 = vpop.f32.mrb[22].mxu1  ;;  %v2212_v38 = vpop.f32.mrb[0].mxu0 }
 0x2d4   : > { %v3677_v39 = vpop.f32.mrb[23].mxu1  ;;  %v3690_v50 = vadd.f32 %v2212_v38, %v1469_v32  ;;  %v2214_v40 = vpop.f32.mrb[1].mxu0 }
 0x2d5   : > { %v3691_v30 = vadd.f32 %v2214_v40, %v1473_v34  ;;  %v2216_v42 = vpop.f32.mrb[2].mxu0 }
 0x2d6   : > { %2262 = vst [vmem:[%s870_s1] sm:$0xff] %v3690_v50  ;;  %v2217_v8 = vpop.f32.mrb[3].mxu0 }
 0x2d7   : > { %2263 = vst [vmem:[%s870_s1 + $0x8] sm:$0xff] %v3691_v30 }
 0x2d8   : > { %4301 = shalt.err (!%p4298_p7)
}
 0x2d9   : > { %s4302_s1 = scalar_lea.hbm %s5357_s30, 384  ;;  %s4306_s13 = scalar_lea.hbm %s5519_s23, 1152 }
 0x2da   : > { %p4303_p8 = scmp.ne.s32.totalorder %s5357_s30, %s4302_s1  ;;  %p4307_p1 = scmp.lt.u32.totalorder %s5357_s30, %s5519_s23 }
 0x2db   : > { %p4308_p6 = scmp.lt.u32.totalorder %s4306_s13, %s4302_s1  ;;  %p4310_p5 = scmp.lt.u32.totalorder %s4302_s1, %s5357_s30 }
 0x2dc   : > { %p4304_p10 = pnand %p4303_p8, %p5520_p3 }
 0x2dd   : > { %p4309_p2 = por %p4308_p6, %p4307_p1 }
 0x2de   : > { %p4305_p4 = pneg %p4304_p10 }
 0x2df   : > { %p4311_p11 = por %p4310_p5, %p4309_p2 }
 0x2e1   : > { %p4312_p0 = pnand %p4311_p11, %p4305_p4 }
 0x2e3   : > { %4315 = shalt.err (!%p4312_p0)
}
 0x2e4   : > { %3756 = dma.vmem_to_hbm [thread:$0]  (%p5520_p3), %s5359_s28, 384, %s5357_s30, %s3069_s25   ;;  %v2652_v43 = vpop.f32.mrb[8].mxu0  ;;  %v2378_v53 = vrot.slane %v5346_v10, %v1468_v17  ;;  %v2382_v54 = vrot.slane %v5346_v10, %v1472_v29 }
 0x2e5   : > { %v2660_v46 = vadd.f32 %v2652_v43, %v2496_v35  ;;  %v3688_v45 = vpop.f32.mrb[9].mxu0  ;;  %s877_s27 = scalar_lea.vmem [#allocation21], %s4941_s0  ;;  %s5521_s18 = sld [smem:[#allocation45_spill]] }
 0x2e6   : > { %v2655_v47 = vpop.f32.mrb[10].mxu0  ;;  %s3102_s28 = sshll.u32 %s877_s27, 4  ;;  %s3074_s0 = scalar_lea.sflag [#allocation22], %s4931_s24  ;;  %s5393_s28 = int_to_ptr.vmem [resolvable:$true] %s3102_s28 }
 0x2e7   : > { %v3689_v44 = vpop.f32.mrb[11].mxu0  ;;  %s4316_s19 = scalar_lea.vmem %s5393_s28, 384  ;;  %s4430_s22 = smov [#allocation21]  }
 0x2e8   : > { %p4317_p12 = scmp.ne.s32.totalorder %s5393_s28, %s4316_s19  ;;  %s4320_s1 = sshll.u32 %s4430_s22, 4  ;;  %s4321_s1 = int_to_ptr.vmem [resolvable:$false] %s4320_s1 }
 0x2e9   : > { %s4322_s16 = scalar_lea.vmem %s4321_s1, 768  ;;  %p4323_p7 = scmp.lt.s32.totalorder %s5393_s28, %s4321_s1 }
 0x2ea   : > { %p4318_p13 = pnand %p4317_p12, %p5520_p3  ;;  %p4324_p8 = scmp.lt.s32.totalorder %s4322_s16, %s4316_s19 }
 0x2eb   : > { %s5522_s14 = smov %s5521_s18  ;;  %s5391_s15 = scalar_lea.hbm %s5521_s18, %s3578_s2 }
 0x2ec   : > { %p4319_p9 = pneg %p4318_p13  ;;  %p4325_p10 = por %p4324_p8, %p4323_p7 }
 0x2ee   : > { %p4326_p4 = pnand %p4325_p10, %p4319_p9 }
 0x303   : > { %v3636_v48 = vpop.f32.mrb[12].mxu0 }
 0x304   : > { %v3637_v49 = vpop.f32.mrb[13].mxu0 }
 0x305   : > { %v3638_v51 = vadd.f32 %v3637_v49, %v3636_v48  ;;  %v3639_v57 = vpop.f32.mrb[14].mxu0 }
 0x306   : > { %v3640_v11 = vpop.f32.mrb[15].mxu0 }
 0x307   : > { %v3064_v52 = vadd.f32 %v3638_v51, %v2660_v46 }
 0x309   : > { %3067 = vst [vmem:[%s877_s27 + $0x10] sm:$0xff] %v3064_v52 }
 0x321   : > { %v3015_v55 = vpop.f32.mrb[12].mxu1 }
 0x322   : > { %v3692_v56 = vadd.f32 %v3015_v55, %v2378_v53  ;;  %v3017_v58 = vpop.f32.mrb[13].mxu1 }
 0x323   : > { %v3693_v59 = vadd.f32 %v3017_v58, %v2382_v54  ;;  %v3019_v3 = vpop.f32.mrb[14].mxu1 }
 0x324   : > { %3065 = vst [vmem:[%s877_s27] sm:$0xff] %v3692_v56  ;;  %v3020_v4 = vpop.f32.mrb[15].mxu1 }
 0x325   : > { %3066 = vst [vmem:[%s877_s27 + $0x8] sm:$0xff] %v3693_v59 }
 0x326   : > { %4329 = shalt.err (!%p4326_p4)
}
 0x327   : > { %s4330_s24 = scalar_lea.hbm %s5391_s15, 384  ;;  %s4334_s13 = scalar_lea.hbm %s5522_s14, 1152 }
 0x328   : > { %p4331_p1 = scmp.ne.s32.totalorder %s5391_s15, %s4330_s24  ;;  %p4335_p5 = scmp.lt.u32.totalorder %s5391_s15, %s5522_s14 }
 0x329   : > { %p4336_p11 = scmp.lt.u32.totalorder %s4334_s13, %s4330_s24  ;;  %p4338_p12 = scmp.lt.u32.totalorder %s4330_s24, %s5391_s15 }
 0x32a   : > { %p4332_p6 = pnand %p4331_p1, %p5520_p3 }
 0x32b   : > { %p4337_p0 = por %p4336_p11, %p4335_p5 }
 0x32c   : > { %p4333_p2 = pneg %p4332_p6 }
 0x32d   : > { %p4339_p13 = por %p4338_p12, %p4337_p0 }
 0x32f   : > { %p4340_p9 = pnand %p4339_p13, %p4333_p2 }
 0x331   : > { %4343 = shalt.err (!%p4340_p9)
}
 0x332   : > { %3757 = dma.vmem_to_hbm [thread:$0]  (%p5520_p3), %s5393_s28, 384, %s5391_s15, %s3074_s0  }
 0x333 PF: > { %s5523_s27 = sld [smem:[#allocation31_spill]]  ;;  %s5524_s30 = sld [smem:[#allocation37_spill]] }
 0x334   : > { %p3783_p7 = scmp.ge.s32.totalorder %s4406_s21, 2 }
 0x339   : > { %s3114_s25 = sand.u32 1, %s5523_s27   ;;  %p5525_p8 = scmp.ne.s32.totalorder %s5524_s30, 0 }
 0x33a   : > { %s3115_s18 = scalar_lea.sflag [#allocation4], %s3114_s25 }
 0x33b   : > { %p3771_p10 = pnand %p3783_p7, %p5525_p8 }
 0x33d   : > { %4385 = dma.done.wait (!%p3771_p10), %s3115_s18, 384  }
 0x33e   : > { %4387 = vsyncadd (!%p3771_p10), %s3115_s18, 4294966912  ;;  %s3124_s19 = scalar_lea.sflag [#allocation22], %s3114_s25 }
 0x33f   : > { %4389 = dma.done.wait (!%p3771_p10), %s3124_s19, 384  }
 0x340   : > { %4391 = vsyncadd (!%p3771_p10), %s3124_s19, 4294966912  ;;  %s5526_s21 = sld [smem:[#allocation33_spill]]  ;;  %s5527_s18 = sld [smem:[#allocation32_spill]] }
 0x341   : > { %s5528_s12 = sld [smem:[#allocation34_spill]]  ;;  %s5529_s19 = smov %s4402_s20 }
 0x346   : > { %p43_p3 = scmp.ge.s32.totalorder %s5526_s21, 5  }
 0x347   : > { %s5530_s20 = smov %s5528_s12 }
 0x348   :  { %45 = sbr.rel (!%p43_p3) target bundleno = 24 (0x18), region = 269 }
 0x34f   :  { %3129 = vsyncpa [#allocation3], 1 }
 0x350   :  { %3131 = vsyncpa [#allocation3 + $0x1], 1 }
 0x351   :  { %3132 = vsyncpa [#allocation6], 1 }
 0x352   :  { %3133 = vsyncpa [#allocation9], 1 }
 0x353   :  { %3135 = vsyncpa [#allocation9 + $0x1], 1 }
 0x354   :  { %3136 = vsyncpa [#allocation12], 1 }
 0x355   :  { %3138 = vsyncpa [#allocation12 + $0x1], 1 }
 0x356   :  { %3139 = vsyncpa [#allocation15], 1 }
 0x357   :  { %3141 = vsyncpa [#allocation15 + $0x1], 1 }
 0x358   :  { %3142 = vsyncpa [#allocation19], 1 }
 0x359   :  { %3144 = vsyncpa [#allocation19 + $0x1], 1 }
 0x35a   :  { %3145 = vsyncpa [#allocation4], 1 }
 0x35b   :  { %3147 = vsyncpa [#allocation4 + $0x1], 1 }
 0x35c   :  { %3148 = vsyncpa [#allocation22], 1 }
 0x35d   :  { %3150 = vsyncpa [#allocation22 + $0x1], 1 }

</bundles_post_ra>
